<compile_context>
chip_gen: v7x
topology: tpu7x:2x2x1
jax: 0.10.0
libtpu: 0.0.40
codegen_flags: <defaults>
</compile_context>

<pallas_src>
import functools

import jax
import jax.numpy as jnp
from jax.experimental import pallas as pl
from jax.experimental.pallas import tpu as pltpu

EPS = 1e-5


def _attention_block_kernel(
    g_ref, x_ref,
    wgT_ref, ggam_ref, gbet_ref,      # W_g: conv1x1 weight (F_int, F_g) + BN gamma/beta
    wxT_ref, xgam_ref, xbet_ref,      # W_x: conv1x1 weight (F_int, F_l) + BN gamma/beta
    wp_ref, pgam_ref, pbet_ref,       # psi: conv1x1 weight (F_int, 1) + BN gamma/beta
    out_ref,
    g_pv, g_s0, g_s1,                 # g1 stats: pivot, centered sum -> scale, sumsq -> shift
    x_pv, x_s0, x_s1,                 # x1 stats
    p_pv, p_s0, p_s1,                 # psi stats
    p_cache,                          # (n_tiles, 1, tile_m): psi pre-BN activation cache
    *, m_total,
):
    ph = pl.program_id(0)     # phase: 0 = g1/x1 stats, 1 = psi stats (+cache), 2 = apply
    t = pl.program_id(1)      # M-tile index
    inv_m = 1.0 / m_total

    def conv1x1(wT, act_ref):
        # Tiny-K 1x1 conv in (C, M) layout: unrolled VPU broadcast-FMAs (C <= 8).
        # Conv bias omitted: the training-mode BN that follows cancels it exactly.
        # TODO(synk): for production channel counts (>=128) use jnp.dot on the MXU;
        #             consider SMEM scalar-weight FMAs to trim per-k broadcasts.
        act = act_ref[...]
        out = wT[:, 0:1] * act[0:1, :]
        for k in range(1, act.shape[0]):
            out = out + wT[:, k:k + 1] * act[k:k + 1, :]
        return out

    # ---------------- phase 0: accumulate (shifted) sum / sumsq of g1, x1 -----------
    @pl.when(ph == 0)
    def _():
        g1 = conv1x1(wgT_ref[...], g_ref)
        x1 = conv1x1(wxT_ref[...], x_ref)

        @pl.when(t == 0)
        def _():
            # Pivot = first tile's per-channel mean (shifted accumulation for stability).
            g_pv[...] = jnp.mean(g1, axis=1, keepdims=True)
            x_pv[...] = jnp.mean(x1, axis=1, keepdims=True)
            for s in (g_s0, g_s1, x_s0, x_s1, p_s0, p_s1):
                s[...] = jnp.zeros_like(s)

        gc = g1 - g_pv[...]
        xc = x1 - x_pv[...]
        g_s0[...] += jnp.sum(gc, axis=1, keepdims=True)
        g_s1[...] += jnp.sum(gc * gc, axis=1, keepdims=True)
        x_s0[...] += jnp.sum(xc, axis=1, keepdims=True)
        x_s1[...] += jnp.sum(xc * xc, axis=1, keepdims=True)

    # ------ phase 1 entry: fold g1/x1 BN stats into per-channel (scale, shift) ------
    @pl.when(jnp.logical_and(ph == 1, t == 0))
    def _():
        for pv, s0, s1, gam, bet in ((g_pv, g_s0, g_s1, ggam_ref, gbet_ref),
                                     (x_pv, x_s0, x_s1, xgam_ref, xbet_ref)):
            d = s0[...] * inv_m
            mu = pv[...] + d
            var = s1[...] * inv_m - d * d          # biased variance (BN training mode)
            scale = gam[...] * jax.lax.rsqrt(var + EPS)
            s0[...] = scale                        # scratch reuse: sum   -> scale
            s1[...] = bet[...] - mu * scale        #               sumsq -> shift

    # ------- phase 1: BN+ReLU, psi pre-BN, cache it, accumulate psi BN stats --------
    @pl.when(ph == 1)
    def _():
        g1 = conv1x1(wgT_ref[...], g_ref)
        x1 = conv1x1(wxT_ref[...], x_ref)
        # Two fused per-channel FMAs + max using the folded (scale, shift).
        a = jnp.maximum(g1 * g_s0[...] + g_s1[...] + x1 * x_s0[...] + x_s1[...], 0.0)
        # Width-1 "conv": VPU multiply + XLU cross-sublane reduce (not a 1-wide matmul).
        p_raw = jnp.sum(a * wp_ref[...], axis=0, keepdims=True)      # (1, tile_m)
        p_cache[t] = p_raw        # phase 2 re-uses this; never re-reads g or recomputes

        @pl.when(t == 0)
        def _():
            p_pv[...] = jnp.mean(p_raw, axis=1, keepdims=True)

        pc = p_raw - p_pv[...]
        p_s0[...] += jnp.sum(pc, axis=1, keepdims=True)
        p_s1[...] += jnp.sum(pc * pc, axis=1, keepdims=True)

    # ------ phase 2 entry: fold psi BN stats into (scale, shift) --------------------
    @pl.when(jnp.logical_and(ph == 2, t == 0))
    def _():
        d = p_s0[...] * inv_m
        mu = p_pv[...] + d
        var = p_s1[...] * inv_m - d * d
        scale = pgam_ref[...] * jax.lax.rsqrt(var + EPS)
        p_s0[...] = scale
        p_s1[...] = pbet_ref[...] - mu * scale

    # ---------------- phase 2: gate x with sigmoid(psi), write out ------------------
    @pl.when(ph == 2)
    def _():
        psi = jax.nn.sigmoid(p_cache[t] * p_s0[...] + p_s1[...])     # (1, tile_m)
        out_ref[...] = (x_ref[...] * psi).astype(out_ref.dtype)


def _pick_tile_m(m, cap=8192):
    # Biggest 128-multiple tile that divides M (raised cap amortizes grid-step overhead).
    tm = max(128, (min(m, cap) // 128) * 128)
    while m % tm:
        tm -= 128
    return tm


def _vmem_limit_bytes():
    # Generation-aware scoped-VMEM limit (v5e/v6e: 128 MiB physical, v7x: 64 MiB).
    try:
        cap = int(getattr(pltpu.get_tpu_info(), "vmem_capacity_bytes",
                          64 * 1024 * 1024))
    except Exception:
        cap = 64 * 1024 * 1024
    return max(32 * 1024 * 1024, min(int(0.75 * cap), 100 * 1024 * 1024))


def attention_block(g, x, params, *, tile_m=None):
    """g, x: NCHW float32 arrays. Returns NCHW array with the same shape as x."""
    N, F_g, H, W = g.shape
    _, F_l, _, _ = x.shape
    F_int = params["wgT"].shape[0]
    M = N * H * W

    # TODO(synk): support M not divisible by 128 via a masked tail tile.
    assert M % 128 == 0, "N*H*W must be a multiple of 128"
    if tile_m is None:
        tile_m = _pick_tile_m(M)
    assert tile_m % 128 == 0 and M % tile_m == 0
    n_tiles = M // tile_m

    # Layout glue: channels -> sublanes, batch*spatial -> lanes.  NCHW -> (C, N, H, W)
    # is a cheap leading-axis permute, followed by a free reshape to (C, M).
    g_cm = jnp.transpose(g, (1, 0, 2, 3)).reshape(F_g, M)
    x_cm = jnp.transpose(x, (1, 0, 2, 3)).reshape(F_l, M)

    args = (
        g_cm, x_cm,
        params["wgT"], params["gn_g"], params["gn_b"],
        params["wxT"], params["xn_g"], params["xn_b"],
        params["wp"], params["pn_g"], params["pn_b"],
    )

    # g: do not re-stream during phase 2 (block index held constant -> no re-fetch).
    g_spec = pl.BlockSpec((F_g, tile_m), lambda ph, t: (0, jnp.where(ph == 2, 0, t)))
    # x: needed in every phase.
    x_spec = pl.BlockSpec((F_l, tile_m), lambda ph, t: (0, t))
    # Parameters: constant block index -> DMA'd once, resident across grid steps.
    full_spec = lambda a: pl.BlockSpec(a.shape, lambda ph, t: (0, 0))
    in_specs = [g_spec, x_spec] + [full_spec(a) for a in args[2:]]
    # Output: block index pinned during phases 0/1 so the (uninitialized) out buffer is
    # only written back to HBM during phase 2.
    out_spec = pl.BlockSpec((F_l, tile_m), lambda ph, t: (0, jnp.where(ph == 2, t, 0)))

    cost = pl.CostEstimate(
        flops=int(2 * 2 * M * F_int * (F_g + F_l) + 10 * M * F_int + 6 * M),
        transcendentals=int(M + 2 * F_int + 1),
        bytes_accessed=int(4 * (2 * M * F_g + 3 * M * F_l + M * F_l)),
    )

    kernel = functools.partial(_attention_block_kernel, m_total=M)

    out_cm = pl.pallas_call(
        kernel,
        out_shape=jax.ShapeDtypeStruct((F_l, M), x.dtype),
        grid_spec=pltpu.PrefetchScalarGridSpec(
            num_scalar_prefetch=0,
            grid=(3, n_tiles),                      # (phase, M-tile); phase outermost
            in_specs=in_specs,
            out_specs=out_spec,
            scratch_shapes=[
                pltpu.VMEM((F_int, 1), jnp.float32),   # g1: pivot
                pltpu.VMEM((F_int, 1), jnp.float32),   # g1: sum   -> folded scale
                pltpu.VMEM((F_int, 1), jnp.float32),   # g1: sumsq -> folded shift
                pltpu.VMEM((F_int, 1), jnp.float32),   # x1: pivot
                pltpu.VMEM((F_int, 1), jnp.float32),   # x1: sum   -> folded scale
                pltpu.VMEM((F_int, 1), jnp.float32),   # x1: sumsq -> folded shift
                pltpu.VMEM((1, 1), jnp.float32),       # psi: pivot
                pltpu.VMEM((1, 1), jnp.float32),       # psi: sum   -> folded scale
                pltpu.VMEM((1, 1), jnp.float32),       # psi: sumsq -> folded shift
                pltpu.VMEM((n_tiles, 1, tile_m), jnp.float32),   # psi pre-BN cache
            ],
        ),
        compiler_params=pltpu.CompilerParams(
            # Both axes sequential: phases are dependent and the M-tile axis accumulates
            # global BN statistics into shared VMEM scratch.
            # TODO(synk): v7x megacore split with per-core partial stats + combine.
            dimension_semantics=("arbitrary", "arbitrary"),
            vmem_limit_bytes=_vmem_limit_bytes(),
        ),
        cost_estimate=cost,
    )(*args)

    # (C, M) -> NCHW
    return jnp.transpose(out_cm.reshape(F_l, N, H, W), (1, 0, 2, 3))


def make_params(key, F_g, F_l, F_int):
    ks = jax.random.split(key, 12)
    n = lambda k, shape, s=0.1: jax.random.normal(k, shape, jnp.float32) * s
    return {
        # 1x1 conv weights stored transposed, (C_out, C_in), for the (C, M) layout.
        "wgT": n(ks[0], (F_int, F_g)),
        "wxT": n(ks[1], (F_int, F_l)),
        "wp":  n(ks[2], (F_int, 1)),
        # Conv biases: only used by the reference — the training-mode BN that follows
        # each conv cancels them exactly, so the kernel never reads them.
        # TODO(synk): if eval-mode BN (running stats) is ever needed, biases must be
        #             applied in-kernel and the stats phases replaced by constants.
        "bg": n(ks[3], (F_int,)),
        "bx": n(ks[4], (F_int,)),
        "bp": n(ks[5], (1,)),
        # BatchNorm affine params as (C, 1) columns.
        "gn_g": 1.0 + n(ks[6], (F_int, 1)),
        "gn_b": n(ks[7], (F_int, 1)),
        "xn_g": 1.0 + n(ks[8], (F_int, 1)),
        "xn_b": n(ks[9], (F_int, 1)),
        "pn_g": 1.0 + n(ks[10], (1, 1)),
        "pn_b": n(ks[11], (1, 1)),
    }


def attention_block_ref(g, x, p):
    """Pure-JAX NCHW reference with the full PyTorch math (conv biases included)."""
    def conv1x1(y, wT, b):                       # wT: (C_out, C_in)
        return jnp.einsum("oi,nihw->nohw", wT, y) + b.reshape(1, -1, 1, 1)

    def bn_train(y, gamma, beta):                # training-mode BN, biased variance
        mu = jnp.mean(y, axis=(0, 2, 3), keepdims=True)
        var = jnp.mean((y - mu) ** 2, axis=(0, 2, 3), keepdims=True)
        return ((y - mu) * jax.lax.rsqrt(var + EPS) * gamma.reshape(1, -1, 1, 1)
                + beta.reshape(1, -1, 1, 1))

    g1 = bn_train(conv1x1(g, p["wgT"], p["bg"]), p["gn_g"], p["gn_b"])
    x1 = bn_train(conv1x1(x, p["wxT"], p["bx"]), p["xn_g"], p["xn_b"])
    a = jnp.maximum(g1 + x1, 0.0)
    psi = jax.nn.sigmoid(bn_train(conv1x1(a, p["wp"].T, p["bp"]), p["pn_g"], p["pn_b"]))
    return x * psi


if __name__ == "__main__":
    F_g, F_l, F_int = 4, 4, 8
    N, H, W = 2, 16, 16

    key = jax.random.PRNGKey(0)
    kg, kx, kp = jax.random.split(key, 3)
    g = jax.random.normal(kg, (N, F_g, H, W), jnp.float32)
    x = jax.random.normal(kx, (N, F_l, H, W), jnp.float32)
    params = make_params(kp, F_g, F_l, F_int)

    ref = attention_block_ref(g, x, params)

    # tile_m=128 -> 4 M-tiles, exercising the cross-tile (global) BN statistic passes
    # and the tile-indexed psi cache.
    out_tiled = jax.block_until_ready(attention_block(g, x, params, tile_m=128))
    assert out_tiled.shape == x.shape
    assert jnp.allclose(out_tiled, ref, atol=1e-4, rtol=1e-4), \
        float(jnp.max(jnp.abs(out_tiled - ref)))

    # Default tile size (single tile at this problem size) exercises n_tiles == 1.
    out_default = jax.block_until_ready(attention_block(g, x, params))
    assert jnp.allclose(out_default, ref, atol=1e-4, rtol=1e-4), \
        float(jnp.max(jnp.abs(out_default - ref)))

    print("KERNEL_OK")
</pallas_src>

<mosaic_0001>
module attributes {stable_mosaic.version = 11 : i64} {
  func.func @_attention_block_kernel(%arg0: i32, %arg1: i32, %arg2: memref<4x128xf32, #tpu.memory_space<vmem>>, %arg3: memref<4x128xf32, #tpu.memory_space<vmem>>, %arg4: memref<8x4xf32, #tpu.memory_space<vmem>>, %arg5: memref<8x1xf32, #tpu.memory_space<vmem>>, %arg6: memref<8x1xf32, #tpu.memory_space<vmem>>, %arg7: memref<8x4xf32, #tpu.memory_space<vmem>>, %arg8: memref<8x1xf32, #tpu.memory_space<vmem>>, %arg9: memref<8x1xf32, #tpu.memory_space<vmem>>, %arg10: memref<8x1xf32, #tpu.memory_space<vmem>>, %arg11: memref<1x1xf32, #tpu.memory_space<vmem>>, %arg12: memref<1x1xf32, #tpu.memory_space<vmem>>, %arg13: memref<4x128xf32, #tpu.memory_space<vmem>>, %arg14: memref<8x1xf32, #tpu.memory_space<vmem>>, %arg15: memref<8x1xf32, #tpu.memory_space<vmem>>, %arg16: memref<8x1xf32, #tpu.memory_space<vmem>>, %arg17: memref<8x1xf32, #tpu.memory_space<vmem>>, %arg18: memref<8x1xf32, #tpu.memory_space<vmem>>, %arg19: memref<8x1xf32, #tpu.memory_space<vmem>>, %arg20: memref<1x1xf32, #tpu.memory_space<vmem>>, %arg21: memref<1x1xf32, #tpu.memory_space<vmem>>, %arg22: memref<1x1xf32, #tpu.memory_space<vmem>>, %arg23: memref<4x1x128xf32, #tpu.memory_space<vmem>>) attributes {dimension_semantics = [#tpu.dimension_semantics<arbitrary>, #tpu.dimension_semantics<arbitrary>], iteration_bounds = array<i64: 3, 4>, scalar_prefetch = 0 : i64, scratch_operands = 10 : i64, tpu.core_type = #tpu.core_type<tc>, window_params = [{transform_indices = @transform_0, window_bounds = array<i64: 4, 128>}, {transform_indices = @transform_1, window_bounds = array<i64: 4, 128>}, {pipeline_mode = #tpu.pipeline_mode<synchronous>, transform_indices = @transform_2, window_bounds = array<i64: 8, 4>}, {pipeline_mode = #tpu.pipeline_mode<synchronous>, transform_indices = @transform_3, window_bounds = array<i64: 8, 1>}, {pipeline_mode = #tpu.pipeline_mode<synchronous>, transform_indices = @transform_4, window_bounds = array<i64: 8, 1>}, {pipeline_mode = #tpu.pipeline_mode<synchronous>, transform_indices = @transform_5, window_bounds = array<i64: 8, 4>}, {pipeline_mode = #tpu.pipeline_mode<synchronous>, transform_indices = @transform_6, window_bounds = array<i64: 8, 1>}, {pipeline_mode = #tpu.pipeline_mode<synchronous>, transform_indices = @transform_7, window_bounds = array<i64: 8, 1>}, {pipeline_mode = #tpu.pipeline_mode<synchronous>, transform_indices = @transform_8, window_bounds = array<i64: 8, 1>}, {pipeline_mode = #tpu.pipeline_mode<synchronous>, transform_indices = @transform_9, window_bounds = array<i64: 1, 1>}, {pipeline_mode = #tpu.pipeline_mode<synchronous>, transform_indices = @transform_10, window_bounds = array<i64: 1, 1>}, {transform_indices = @transform_11, window_bounds = array<i64: 4, 128>}]} {
    %c0_i32 = arith.constant 0 : i32
    %0 = arith.cmpi eq, %arg0, %c0_i32 : i32
    %1 = arith.extui %0 : i1 to i32
    %c0_i32_0 = arith.constant 0 : i32
    %2 = arith.cmpi ne, %1, %c0_i32_0 : i32
    scf.if %2 {
      %c0 = arith.constant 0 : index
      %c0_9 = arith.constant 0 : index
      %19 = vector.load %arg4[%c0, %c0_9] : memref<8x4xf32, #tpu.memory_space<vmem>>, vector<8x4xf32>
      %c0_10 = arith.constant 0 : index
      %c0_11 = arith.constant 0 : index
      %20 = vector.load %arg2[%c0_10, %c0_11] : memref<4x128xf32, #tpu.memory_space<vmem>>, vector<4x128xf32>
      %21 = vector.extract_strided_slice %19 {offsets = [0, 0], sizes = [8, 1], strides = [1, 1]} : vector<8x4xf32> to vector<8x1xf32>
      %22 = vector.extract_strided_slice %20 {offsets = [0, 0], sizes = [1, 128], strides = [1, 1]} : vector<4x128xf32> to vector<1x128xf32>
      %23 = vector.broadcast %21 : vector<8x1xf32> to vector<8x128xf32>
      %24 = vector.broadcast %22 : vector<1x128xf32> to vector<8x128xf32>
      %25 = arith.mulf %23, %24 : vector<8x128xf32>
      %26 = vector.extract_strided_slice %19 {offsets = [0, 1], sizes = [8, 1], strides = [1, 1]} : vector<8x4xf32> to vector<8x1xf32>
      %27 = vector.extract_strided_slice %20 {offsets = [1, 0], sizes = [1, 128], strides = [1, 1]} : vector<4x128xf32> to vector<1x128xf32>
      %28 = vector.broadcast %26 : vector<8x1xf32> to vector<8x128xf32>
      %29 = vector.broadcast %27 : vector<1x128xf32> to vector<8x128xf32>
      %30 = arith.mulf %28, %29 : vector<8x128xf32>
      %31 = arith.addf %25, %30 : vector<8x128xf32>
      %32 = vector.extract_strided_slice %19 {offsets = [0, 2], sizes = [8, 1], strides = [1, 1]} : vector<8x4xf32> to vector<8x1xf32>
      %33 = vector.extract_strided_slice %20 {offsets = [2, 0], sizes = [1, 128], strides = [1, 1]} : vector<4x128xf32> to vector<1x128xf32>
      %34 = vector.broadcast %32 : vector<8x1xf32> to vector<8x128xf32>
      %35 = vector.broadcast %33 : vector<1x128xf32> to vector<8x128xf32>
      %36 = arith.mulf %34, %35 : vector<8x128xf32>
      %37 = arith.addf %31, %36 : vector<8x128xf32>
      %38 = vector.extract_strided_slice %19 {offsets = [0, 3], sizes = [8, 1], strides = [1, 1]} : vector<8x4xf32> to vector<8x1xf32>
      %39 = vector.extract_strided_slice %20 {offsets = [3, 0], sizes = [1, 128], strides = [1, 1]} : vector<4x128xf32> to vector<1x128xf32>
      %40 = vector.broadcast %38 : vector<8x1xf32> to vector<8x128xf32>
      %41 = vector.broadcast %39 : vector<1x128xf32> to vector<8x128xf32>
      %42 = arith.mulf %40, %41 : vector<8x128xf32>
      %43 = arith.addf %37, %42 : vector<8x128xf32>
      %c0_12 = arith.constant 0 : index
      %c0_13 = arith.constant 0 : index
      %44 = vector.load %arg7[%c0_12, %c0_13] : memref<8x4xf32, #tpu.memory_space<vmem>>, vector<8x4xf32>
      %c0_14 = arith.constant 0 : index
      %c0_15 = arith.constant 0 : index
      %45 = vector.load %arg3[%c0_14, %c0_15] : memref<4x128xf32, #tpu.memory_space<vmem>>, vector<4x128xf32>
      %46 = vector.extract_strided_slice %44 {offsets = [0, 0], sizes = [8, 1], strides = [1, 1]} : vector<8x4xf32> to vector<8x1xf32>
      %47 = vector.extract_strided_slice %45 {offsets = [0, 0], sizes = [1, 128], strides = [1, 1]} : vector<4x128xf32> to vector<1x128xf32>
      %48 = vector.broadcast %46 : vector<8x1xf32> to vector<8x128xf32>
      %49 = vector.broadcast %47 : vector<1x128xf32> to vector<8x128xf32>
      %50 = arith.mulf %48, %49 : vector<8x128xf32>
      %51 = vector.extract_strided_slice %44 {offsets = [0, 1], sizes = [8, 1], strides = [1, 1]} : vector<8x4xf32> to vector<8x1xf32>
      %52 = vector.extract_strided_slice %45 {offsets = [1, 0], sizes = [1, 128], strides = [1, 1]} : vector<4x128xf32> to vector<1x128xf32>
      %53 = vector.broadcast %51 : vector<8x1xf32> to vector<8x128xf32>
      %54 = vector.broadcast %52 : vector<1x128xf32> to vector<8x128xf32>
      %55 = arith.mulf %53, %54 : vector<8x128xf32>
      %56 = arith.addf %50, %55 : vector<8x128xf32>
      %57 = vector.extract_strided_slice %44 {offsets = [0, 2], sizes = [8, 1], strides = [1, 1]} : vector<8x4xf32> to vector<8x1xf32>
      %58 = vector.extract_strided_slice %45 {offsets = [2, 0], sizes = [1, 128], strides = [1, 1]} : vector<4x128xf32> to vector<1x128xf32>
      %59 = vector.broadcast %57 : vector<8x1xf32> to vector<8x128xf32>
      %60 = vector.broadcast %58 : vector<1x128xf32> to vector<8x128xf32>
      %61 = arith.mulf %59, %60 : vector<8x128xf32>
      %62 = arith.addf %56, %61 : vector<8x128xf32>
      %63 = vector.extract_strided_slice %44 {offsets = [0, 3], sizes = [8, 1], strides = [1, 1]} : vector<8x4xf32> to vector<8x1xf32>
      %64 = vector.extract_strided_slice %45 {offsets = [3, 0], sizes = [1, 128], strides = [1, 1]} : vector<4x128xf32> to vector<1x128xf32>
      %65 = vector.broadcast %63 : vector<8x1xf32> to vector<8x128xf32>
      %66 = vector.broadcast %64 : vector<1x128xf32> to vector<8x128xf32>
      %67 = arith.mulf %65, %66 : vector<8x128xf32>
      %68 = arith.addf %62, %67 : vector<8x128xf32>
      %c0_i32_16 = arith.constant 0 : i32
      %69 = arith.cmpi eq, %arg1, %c0_i32_16 : i32
      %70 = arith.extui %69 : i1 to i32
      %c0_i32_17 = arith.constant 0 : i32
      %71 = arith.cmpi ne, %70, %c0_i32_17 : i32
      scf.if %71 {
        %cst_41 = arith.constant dense<0.000000e+00> : vector<8xf32>
        %100 = vector.multi_reduction <add>, %43, %cst_41 [1] : vector<8x128xf32> to vector<8xf32>
        %101 = vector.shape_cast %100 : vector<8xf32> to vector<8x1xf32>
        %cst_42 = arith.constant 1.280000e+02 : f32
        %102 = vector.broadcast %cst_42 : f32 to vector<8x1xf32>
        %103 = arith.divf %101, %102 : vector<8x1xf32>
        %c0_43 = arith.constant 0 : index
        %c0_44 = arith.constant 0 : index
        %104 = vector.load %arg14[%c0_43, %c0_44] : memref<8x1xf32, #tpu.memory_space<vmem>>, vector<8x1xf32>
        tpu.vector_store %arg14[%c0_43, %c0_44], %103 {strides = array<i32>} : memref<8x1xf32, #tpu.memory_space<vmem>>, vector<8x1xf32>,
        %cst_45 = arith.constant dense<0.000000e+00> : vector<8xf32>
        %105 = vector.multi_reduction <add>, %68, %cst_45 [1] : vector<8x128xf32> to vector<8xf32>
        %106 = vector.shape_cast %105 : vector<8xf32> to vector<8x1xf32>
        %cst_46 = arith.constant 1.280000e+02 : f32
        %107 = vector.broadcast %cst_46 : f32 to vector<8x1xf32>
        %108 = arith.divf %106, %107 : vector<8x1xf32>
        %c0_47 = arith.constant 0 : index
        %c0_48 = arith.constant 0 : index
        %109 = vector.load %arg17[%c0_47, %c0_48] : memref<8x1xf32, #tpu.memory_space<vmem>>, vector<8x1xf32>
        tpu.vector_store %arg17[%c0_47, %c0_48], %108 {strides = array<i32>} : memref<8x1xf32, #tpu.memory_space<vmem>>, vector<8x1xf32>,
        %cst_49 = arith.constant 0.000000e+00 : f32
        %110 = vector.broadcast %cst_49 : f32 to vector<8x1xf32>
        %c0_50 = arith.constant 0 : index
        %c0_51 = arith.constant 0 : index
        %111 = vector.load %arg15[%c0_50, %c0_51] : memref<8x1xf32, #tpu.memory_space<vmem>>, vector<8x1xf32>
        tpu.vector_store %arg15[%c0_50, %c0_51], %110 {strides = array<i32>} : memref<8x1xf32, #tpu.memory_space<vmem>>, vector<8x1xf32>,
        %cst_52 = arith.constant 0.000000e+00 : f32
        %112 = vector.broadcast %cst_52 : f32 to vector<8x1xf32>
        %c0_53 = arith.constant 0 : index
        %c0_54 = arith.constant 0 : index
        %113 = vector.load %arg16[%c0_53, %c0_54] : memref<8x1xf32, #tpu.memory_space<vmem>>, vector<8x1xf32>
        tpu.vector_store %arg16[%c0_53, %c0_54], %112 {strides = array<i32>} : memref<8x1xf32, #tpu.memory_space<vmem>>, vector<8x1xf32>,
        %cst_55 = arith.constant 0.000000e+00 : f32
        %114 = vector.broadcast %cst_55 : f32 to vector<8x1xf32>
        %c0_56 = arith.constant 0 : index
        %c0_57 = arith.constant 0 : index
        %115 = vector.load %arg18[%c0_56, %c0_57] : memref<8x1xf32, #tpu.memory_space<vmem>>, vector<8x1xf32>
        tpu.vector_store %arg18[%c0_56, %c0_57], %114 {strides = array<i32>} : memref<8x1xf32, #tpu.memory_space<vmem>>, vector<8x1xf32>,
        %cst_58 = arith.constant 0.000000e+00 : f32
        %116 = vector.broadcast %cst_58 : f32 to vector<8x1xf32>
        %c0_59 = arith.constant 0 : index
        %c0_60 = arith.constant 0 : index
        %117 = vector.load %arg19[%c0_59, %c0_60] : memref<8x1xf32, #tpu.memory_space<vmem>>, vector<8x1xf32>
        tpu.vector_store %arg19[%c0_59, %c0_60], %116 {strides = array<i32>} : memref<8x1xf32, #tpu.memory_space<vmem>>, vector<8x1xf32>,
        %cst_61 = arith.constant 0.000000e+00 : f32
        %118 = vector.broadcast %cst_61 : f32 to vector<1x1xf32>
        %c0_62 = arith.constant 0 : index
        %c0_63 = arith.constant 0 : index
        %119 = vector.load %arg21[%c0_62, %c0_63] : memref<1x1xf32, #tpu.memory_space<vmem>>, vector<1x1xf32>
        tpu.vector_store %arg21[%c0_62, %c0_63], %118 {strides = array<i32>} : memref<1x1xf32, #tpu.memory_space<vmem>>, vector<1x1xf32>,
        %cst_64 = arith.constant 0.000000e+00 : f32
        %120 = vector.broadcast %cst_64 : f32 to vector<1x1xf32>
        %c0_65 = arith.constant 0 : index
        %c0_66 = arith.constant 0 : index
        %121 = vector.load %arg22[%c0_65, %c0_66] : memref<1x1xf32, #tpu.memory_space<vmem>>, vector<1x1xf32>
        tpu.vector_store %arg22[%c0_65, %c0_66], %120 {strides = array<i32>} : memref<1x1xf32, #tpu.memory_space<vmem>>, vector<1x1xf32>,
      } else {
      }
      %c0_18 = arith.constant 0 : index
      %c0_19 = arith.constant 0 : index
      %72 = vector.load %arg14[%c0_18, %c0_19] : memref<8x1xf32, #tpu.memory_space<vmem>>, vector<8x1xf32>
      %73 = vector.broadcast %72 : vector<8x1xf32> to vector<8x128xf32>
      %74 = arith.subf %43, %73 : vector<8x128xf32>
      %c0_20 = arith.constant 0 : index
      %c0_21 = arith.constant 0 : index
      %75 = vector.load %arg17[%c0_20, %c0_21] : memref<8x1xf32, #tpu.memory_space<vmem>>, vector<8x1xf32>
      %76 = vector.broadcast %75 : vector<8x1xf32> to vector<8x128xf32>
      %77 = arith.subf %68, %76 : vector<8x128xf32>
      %c0_22 = arith.constant 0 : index
      %c0_23 = arith.constant 0 : index
      %78 = vector.load %arg15[%c0_22, %c0_23] : memref<8x1xf32, #tpu.memory_space<vmem>>, vector<8x1xf32>
      %cst = arith.constant dense<0.000000e+00> : vector<8xf32>
      %79 = vector.multi_reduction <add>, %74, %cst [1] : vector<8x128xf32> to vector<8xf32>
      %80 = vector.shape_cast %79 : vector<8xf32> to vector<8x1xf32>
      %81 = arith.addf %78, %80 : vector<8x1xf32>
      %c0_24 = arith.constant 0 : index
      %c0_25 = arith.constant 0 : index
      %82 = vector.load %arg15[%c0_24, %c0_25] : memref<8x1xf32, #tpu.memory_space<vmem>>, vector<8x1xf32>
      tpu.vector_store %arg15[%c0_24, %c0_25], %81 {strides = array<i32>} : memref<8x1xf32, #tpu.memory_space<vmem>>, vector<8x1xf32>,
      %c0_26 = arith.constant 0 : index
      %c0_27 = arith.constant 0 : index
      %83 = vector.load %arg16[%c0_26, %c0_27] : memref<8x1xf32, #tpu.memory_space<vmem>>, vector<8x1xf32>
      %84 = arith.mulf %74, %74 : vector<8x128xf32>
      %cst_28 = arith.constant dense<0.000000e+00> : vector<8xf32>
      %85 = vector.multi_reduction <add>, %84, %cst_28 [1] : vector<8x128xf32> to vector<8xf32>
      %86 = vector.shape_cast %85 : vector<8xf32> to vector<8x1xf32>
      %87 = arith.addf %83, %86 : vector<8x1xf32>
      %c0_29 = arith.constant 0 : index
      %c0_30 = arith.constant 0 : index
      %88 = vector.load %arg16[%c0_29, %c0_30] : memref<8x1xf32, #tpu.memory_space<vmem>>, vector<8x1xf32>
      tpu.vector_store %arg16[%c0_29, %c0_30], %87 {strides = array<i32>} : memref<8x1xf32, #tpu.memory_space<vmem>>, vector<8x1xf32>,
      %c0_31 = arith.constant 0 : index
      %c0_32 = arith.constant 0 : index
      %89 = vector.load %arg18[%c0_31, %c0_32] : memref<8x1xf32, #tpu.memory_space<vmem>>, vector<8x1xf32>
      %cst_33 = arith.constant dense<0.000000e+00> : vector<8xf32>
      %90 = vector.multi_reduction <add>, %77, %cst_33 [1] : vector<8x128xf32> to vector<8xf32>
      %91 = vector.shape_cast %90 : vector<8xf32> to vector<8x1xf32>
      %92 = arith.addf %89, %91 : vector<8x1xf32>
      %c0_34 = arith.constant 0 : index
      %c0_35 = arith.constant 0 : index
      %93 = vector.load %arg18[%c0_34, %c0_35] : memref<8x1xf32, #tpu.memory_space<vmem>>, vector<8x1xf32>
      tpu.vector_store %arg18[%c0_34, %c0_35], %92 {strides = array<i32>} : memref<8x1xf32, #tpu.memory_space<vmem>>, vector<8x1xf32>,
      %c0_36 = arith.constant 0 : index
      %c0_37 = arith.constant 0 : index
      %94 = vector.load %arg19[%c0_36, %c0_37] : memref<8x1xf32, #tpu.memory_space<vmem>>, vector<8x1xf32>
      %95 = arith.mulf %77, %77 : vector<8x128xf32>
      %cst_38 = arith.constant dense<0.000000e+00> : vector<8xf32>
      %96 = vector.multi_reduction <add>, %95, %cst_38 [1] : vector<8x128xf32> to vector<8xf32>
      %97 = vector.shape_cast %96 : vector<8xf32> to vector<8x1xf32>
      %98 = arith.addf %94, %97 : vector<8x1xf32>
      %c0_39 = arith.constant 0 : index
      %c0_40 = arith.constant 0 : index
      %99 = vector.load %arg19[%c0_39, %c0_40] : memref<8x1xf32, #tpu.memory_space<vmem>>, vector<8x1xf32>
      tpu.vector_store %arg19[%c0_39, %c0_40], %98 {strides = array<i32>} : memref<8x1xf32, #tpu.memory_space<vmem>>, vector<8x1xf32>,
    } else {
    }
    %c1_i32 = arith.constant 1 : i32
    %3 = arith.cmpi eq, %arg0, %c1_i32 : i32
    %c0_i32_1 = arith.constant 0 : i32
    %4 = arith.cmpi eq, %arg1, %c0_i32_1 : i32
    %5 = arith.andi %3, %4 : i1
    %6 = arith.extui %5 : i1 to i32
    %c0_i32_2 = arith.constant 0 : i32
    %7 = arith.cmpi ne, %6, %c0_i32_2 : i32
    scf.if %7 {
      %c0 = arith.constant 0 : index
      %c0_9 = arith.constant 0 : index
      %19 = vector.load %arg15[%c0, %c0_9] : memref<8x1xf32, #tpu.memory_space<vmem>>, vector<8x1xf32>
      %cst = arith.constant 0.001953125 : f32
      %20 = vector.broadcast %cst : f32 to vector<8x1xf32>
      %21 = arith.mulf %19, %20 : vector<8x1xf32>
      %c0_10 = arith.constant 0 : index
      %c0_11 = arith.constant 0 : index
      %22 = vector.load %arg14[%c0_10, %c0_11] : memref<8x1xf32, #tpu.memory_space<vmem>>, vector<8x1xf32>
      %23 = arith.addf %22, %21 : vector<8x1xf32>
      %c0_12 = arith.constant 0 : index
      %c0_13 = arith.constant 0 : index
      %24 = vector.load %arg16[%c0_12, %c0_13] : memref<8x1xf32, #tpu.memory_space<vmem>>, vector<8x1xf32>
      %cst_14 = arith.constant 0.001953125 : f32
      %25 = vector.broadcast %cst_14 : f32 to vector<8x1xf32>
      %26 = arith.mulf %24, %25 : vector<8x1xf32>
      %27 = arith.mulf %21, %21 : vector<8x1xf32>
      %28 = arith.subf %26, %27 : vector<8x1xf32>
      %c0_15 = arith.constant 0 : index
      %c0_16 = arith.constant 0 : index
      %29 = vector.load %arg5[%c0_15, %c0_16] : memref<8x1xf32, #tpu.memory_space<vmem>>, vector<8x1xf32>
      %cst_17 = arith.constant 9.99999974E-6 : f32
      %30 = vector.broadcast %cst_17 : f32 to vector<8x1xf32>
      %31 = arith.addf %28, %30 : vector<8x1xf32>
      %32 = math.rsqrt %31 : vector<8x1xf32>
      %33 = arith.mulf %29, %32 : vector<8x1xf32>
      %c0_18 = arith.constant 0 : index
      %c0_19 = arith.constant 0 : index
      %34 = vector.load %arg15[%c0_18, %c0_19] : memref<8x1xf32, #tpu.memory_space<vmem>>, vector<8x1xf32>
      tpu.vector_store %arg15[%c0_18, %c0_19], %33 {strides = array<i32>} : memref<8x1xf32, #tpu.memory_space<vmem>>, vector<8x1xf32>,
      %c0_20 = arith.constant 0 : index
      %c0_21 = arith.constant 0 : index
      %35 = vector.load %arg6[%c0_20, %c0_21] : memref<8x1xf32, #tpu.memory_space<vmem>>, vector<8x1xf32>
      %36 = arith.mulf %23, %33 : vector<8x1xf32>
      %37 = arith.subf %35, %36 : vector<8x1xf32>
      %c0_22 = arith.constant 0 : index
      %c0_23 = arith.constant 0 : index
      %38 = vector.load %arg16[%c0_22, %c0_23] : memref<8x1xf32, #tpu.memory_space<vmem>>, vector<8x1xf32>
      tpu.vector_store %arg16[%c0_22, %c0_23], %37 {strides = array<i32>} : memref<8x1xf32, #tpu.memory_space<vmem>>, vector<8x1xf32>,
      %c0_24 = arith.constant 0 : index
      %c0_25 = arith.constant 0 : index
      %39 = vector.load %arg18[%c0_24, %c0_25] : memref<8x1xf32, #tpu.memory_space<vmem>>, vector<8x1xf32>
      %cst_26 = arith.constant 0.001953125 : f32
      %40 = vector.broadcast %cst_26 : f32 to vector<8x1xf32>
      %41 = arith.mulf %39, %40 : vector<8x1xf32>
      %c0_27 = arith.constant 0 : index
      %c0_28 = arith.constant 0 : index
      %42 = vector.load %arg17[%c0_27, %c0_28] : memref<8x1xf32, #tpu.memory_space<vmem>>, vector<8x1xf32>
      %43 = arith.addf %42, %41 : vector<8x1xf32>
      %c0_29 = arith.constant 0 : index
      %c0_30 = arith.constant 0 : index
      %44 = vector.load %arg19[%c0_29, %c0_30] : memref<8x1xf32, #tpu.memory_space<vmem>>, vector<8x1xf32>
      %cst_31 = arith.constant 0.001953125 : f32
      %45 = vector.broadcast %cst_31 : f32 to vector<8x1xf32>
      %46 = arith.mulf %44, %45 : vector<8x1xf32>
      %47 = arith.mulf %41, %41 : vector<8x1xf32>
      %48 = arith.subf %46, %47 : vector<8x1xf32>
      %c0_32 = arith.constant 0 : index
      %c0_33 = arith.constant 0 : index
      %49 = vector.load %arg8[%c0_32, %c0_33] : memref<8x1xf32, #tpu.memory_space<vmem>>, vector<8x1xf32>
      %cst_34 = arith.constant 9.99999974E-6 : f32
      %50 = vector.broadcast %cst_34 : f32 to vector<8x1xf32>
      %51 = arith.addf %48, %50 : vector<8x1xf32>
      %52 = math.rsqrt %51 : vector<8x1xf32>
      %53 = arith.mulf %49, %52 : vector<8x1xf32>
      %c0_35 = arith.constant 0 : index
      %c0_36 = arith.constant 0 : index
      %54 = vector.load %arg18[%c0_35, %c0_36] : memref<8x1xf32, #tpu.memory_space<vmem>>, vector<8x1xf32>
      tpu.vector_store %arg18[%c0_35, %c0_36], %53 {strides = array<i32>} : memref<8x1xf32, #tpu.memory_space<vmem>>, vector<8x1xf32>,
      %c0_37 = arith.constant 0 : index
      %c0_38 = arith.constant 0 : index
      %55 = vector.load %arg9[%c0_37, %c0_38] : memref<8x1xf32, #tpu.memory_space<vmem>>, vector<8x1xf32>
      %56 = arith.mulf %43, %53 : vector<8x1xf32>
      %57 = arith.subf %55, %56 : vector<8x1xf32>
      %c0_39 = arith.constant 0 : index
      %c0_40 = arith.constant 0 : index
      %58 = vector.load %arg19[%c0_39, %c0_40] : memref<8x1xf32, #tpu.memory_space<vmem>>, vector<8x1xf32>
      tpu.vector_store %arg19[%c0_39, %c0_40], %57 {strides = array<i32>} : memref<8x1xf32, #tpu.memory_space<vmem>>, vector<8x1xf32>,
    } else {
    }
    %c1_i32_3 = arith.constant 1 : i32
    %8 = arith.cmpi eq, %arg0, %c1_i32_3 : i32
    %9 = arith.extui %8 : i1 to i32
    %c0_i32_4 = arith.constant 0 : i32
    %10 = arith.cmpi ne, %9, %c0_i32_4 : i32
    scf.if %10 {
      %c0 = arith.constant 0 : index
      %c0_9 = arith.constant 0 : index
      %19 = vector.load %arg4[%c0, %c0_9] : memref<8x4xf32, #tpu.memory_space<vmem>>, vector<8x4xf32>
      %c0_10 = arith.constant 0 : index
      %c0_11 = arith.constant 0 : index
      %20 = vector.load %arg2[%c0_10, %c0_11] : memref<4x128xf32, #tpu.memory_space<vmem>>, vector<4x128xf32>
      %21 = vector.extract_strided_slice %19 {offsets = [0, 0], sizes = [8, 1], strides = [1, 1]} : vector<8x4xf32> to vector<8x1xf32>
      %22 = vector.extract_strided_slice %20 {offsets = [0, 0], sizes = [1, 128], strides = [1, 1]} : vector<4x128xf32> to vector<1x128xf32>
      %23 = vector.broadcast %21 : vector<8x1xf32> to vector<8x128xf32>
      %24 = vector.broadcast %22 : vector<1x128xf32> to vector<8x128xf32>
      %25 = arith.mulf %23, %24 : vector<8x128xf32>
      %26 = vector.extract_strided_slice %19 {offsets = [0, 1], sizes = [8, 1], strides = [1, 1]} : vector<8x4xf32> to vector<8x1xf32>
      %27 = vector.extract_strided_slice %20 {offsets = [1, 0], sizes = [1, 128], strides = [1, 1]} : vector<4x128xf32> to vector<1x128xf32>
      %28 = vector.broadcast %26 : vector<8x1xf32> to vector<8x128xf32>
      %29 = vector.broadcast %27 : vector<1x128xf32> to vector<8x128xf32>
      %30 = arith.mulf %28, %29 : vector<8x128xf32>
      %31 = arith.addf %25, %30 : vector<8x128xf32>
      %32 = vector.extract_strided_slice %19 {offsets = [0, 2], sizes = [8, 1], strides = [1, 1]} : vector<8x4xf32> to vector<8x1xf32>
      %33 = vector.extract_strided_slice %20 {offsets = [2, 0], sizes = [1, 128], strides = [1, 1]} : vector<4x128xf32> to vector<1x128xf32>
      %34 = vector.broadcast %32 : vector<8x1xf32> to vector<8x128xf32>
      %35 = vector.broadcast %33 : vector<1x128xf32> to vector<8x128xf32>
      %36 = arith.mulf %34, %35 : vector<8x128xf32>
      %37 = arith.addf %31, %36 : vector<8x128xf32>
      %38 = vector.extract_strided_slice %19 {offsets = [0, 3], sizes = [8, 1], strides = [1, 1]} : vector<8x4xf32> to vector<8x1xf32>
      %39 = vector.extract_strided_slice %20 {offsets = [3, 0], sizes = [1, 128], strides = [1, 1]} : vector<4x128xf32> to vector<1x128xf32>
      %40 = vector.broadcast %38 : vector<8x1xf32> to vector<8x128xf32>
      %41 = vector.broadcast %39 : vector<1x128xf32> to vector<8x128xf32>
      %42 = arith.mulf %40, %41 : vector<8x128xf32>
      %43 = arith.addf %37, %42 : vector<8x128xf32>
      %c0_12 = arith.constant 0 : index
      %c0_13 = arith.constant 0 : index
      %44 = vector.load %arg7[%c0_12, %c0_13] : memref<8x4xf32, #tpu.memory_space<vmem>>, vector<8x4xf32>
      %c0_14 = arith.constant 0 : index
      %c0_15 = arith.constant 0 : index
      %45 = vector.load %arg3[%c0_14, %c0_15] : memref<4x128xf32, #tpu.memory_space<vmem>>, vector<4x128xf32>
      %46 = vector.extract_strided_slice %44 {offsets = [0, 0], sizes = [8, 1], strides = [1, 1]} : vector<8x4xf32> to vector<8x1xf32>
      %47 = vector.extract_strided_slice %45 {offsets = [0, 0], sizes = [1, 128], strides = [1, 1]} : vector<4x128xf32> to vector<1x128xf32>
      %48 = vector.broadcast %46 : vector<8x1xf32> to vector<8x128xf32>
      %49 = vector.broadcast %47 : vector<1x128xf32> to vector<8x128xf32>
      %50 = arith.mulf %48, %49 : vector<8x128xf32>
      %51 = vector.extract_strided_slice %44 {offsets = [0, 1], sizes = [8, 1], strides = [1, 1]} : vector<8x4xf32> to vector<8x1xf32>
      %52 = vector.extract_strided_slice %45 {offsets = [1, 0], sizes = [1, 128], strides = [1, 1]} : vector<4x128xf32> to vector<1x128xf32>
      %53 = vector.broadcast %51 : vector<8x1xf32> to vector<8x128xf32>
      %54 = vector.broadcast %52 : vector<1x128xf32> to vector<8x128xf32>
      %55 = arith.mulf %53, %54 : vector<8x128xf32>
      %56 = arith.addf %50, %55 : vector<8x128xf32>
      %57 = vector.extract_strided_slice %44 {offsets = [0, 2], sizes = [8, 1], strides = [1, 1]} : vector<8x4xf32> to vector<8x1xf32>
      %58 = vector.extract_strided_slice %45 {offsets = [2, 0], sizes = [1, 128], strides = [1, 1]} : vector<4x128xf32> to vector<1x128xf32>
      %59 = vector.broadcast %57 : vector<8x1xf32> to vector<8x128xf32>
      %60 = vector.broadcast %58 : vector<1x128xf32> to vector<8x128xf32>
      %61 = arith.mulf %59, %60 : vector<8x128xf32>
      %62 = arith.addf %56, %61 : vector<8x128xf32>
      %63 = vector.extract_strided_slice %44 {offsets = [0, 3], sizes = [8, 1], strides = [1, 1]} : vector<8x4xf32> to vector<8x1xf32>
      %64 = vector.extract_strided_slice %45 {offsets = [3, 0], sizes = [1, 128], strides = [1, 1]} : vector<4x128xf32> to vector<1x128xf32>
      %65 = vector.broadcast %63 : vector<8x1xf32> to vector<8x128xf32>
      %66 = vector.broadcast %64 : vector<1x128xf32> to vector<8x128xf32>
      %67 = arith.mulf %65, %66 : vector<8x128xf32>
      %68 = arith.addf %62, %67 : vector<8x128xf32>
      %c0_16 = arith.constant 0 : index
      %c0_17 = arith.constant 0 : index
      %69 = vector.load %arg15[%c0_16, %c0_17] : memref<8x1xf32, #tpu.memory_space<vmem>>, vector<8x1xf32>
      %70 = vector.broadcast %69 : vector<8x1xf32> to vector<8x128xf32>
      %71 = arith.mulf %43, %70 : vector<8x128xf32>
      %c0_18 = arith.constant 0 : index
      %c0_19 = arith.constant 0 : index
      %72 = vector.load %arg16[%c0_18, %c0_19] : memref<8x1xf32, #tpu.memory_space<vmem>>, vector<8x1xf32>
      %73 = vector.broadcast %72 : vector<8x1xf32> to vector<8x128xf32>
      %74 = arith.addf %71, %73 : vector<8x128xf32>
      %c0_20 = arith.constant 0 : index
      %c0_21 = arith.constant 0 : index
      %75 = vector.load %arg18[%c0_20, %c0_21] : memref<8x1xf32, #tpu.memory_space<vmem>>, vector<8x1xf32>
      %76 = vector.broadcast %75 : vector<8x1xf32> to vector<8x128xf32>
      %77 = arith.mulf %68, %76 : vector<8x128xf32>
      %78 = arith.addf %74, %77 : vector<8x128xf32>
      %c0_22 = arith.constant 0 : index
      %c0_23 = arith.constant 0 : index
      %79 = vector.load %arg19[%c0_22, %c0_23] : memref<8x1xf32, #tpu.memory_space<vmem>>, vector<8x1xf32>
      %80 = vector.broadcast %79 : vector<8x1xf32> to vector<8x128xf32>
      %81 = arith.addf %78, %80 : vector<8x128xf32>
      %cst = arith.constant 0.000000e+00 : f32
      %82 = vector.broadcast %cst : f32 to vector<8x128xf32>
      %83 = arith.maximumf %81, %82 : vector<8x128xf32>
      %c0_24 = arith.constant 0 : index
      %c0_25 = arith.constant 0 : index
      %84 = vector.load %arg10[%c0_24, %c0_25] : memref<8x1xf32, #tpu.memory_space<vmem>>, vector<8x1xf32>
      %85 = vector.broadcast %84 : vector<8x1xf32> to vector<8x128xf32>
      %86 = arith.mulf %83, %85 : vector<8x128xf32>
      %cst_26 = arith.constant dense<0.000000e+00> : vector<128xf32>
      %87 = vector.multi_reduction <add>, %86, %cst_26 [0] : vector<8x128xf32> to vector<128xf32>
      %88 = vector.shape_cast %87 : vector<128xf32> to vector<1x128xf32>
      %89 = arith.index_cast %arg1 : i32 to index
      %c0_27 = arith.constant 0 : index
      %c0_28 = arith.constant 0 : index
      %90 = vector.load %arg23[%89, %c0_27, %c0_28] : memref<4x1x128xf32, #tpu.memory_space<vmem>>, vector<1x1x128xf32>
      %91 = vector.shape_cast %90 : vector<1x1x128xf32> to vector<1x128xf32>
      %92 = vector.shape_cast %88 : vector<1x128xf32> to vector<1x1x128xf32>
      tpu.vector_store %arg23[%89, %c0_27, %c0_28], %92 {strides = array<i32>} : memref<4x1x128xf32, #tpu.memory_space<vmem>>, vector<1x1x128xf32>,
      %c0_i32_29 = arith.constant 0 : i32
      %93 = arith.cmpi eq, %arg1, %c0_i32_29 : i32
      %94 = arith.extui %93 : i1 to i32
      %c0_i32_30 = arith.constant 0 : i32
      %95 = arith.cmpi ne, %94, %c0_i32_30 : i32
      scf.if %95 {
        %cst_43 = arith.constant dense<0.000000e+00> : vector<1xf32>
        %110 = vector.multi_reduction <add>, %88, %cst_43 [1] : vector<1x128xf32> to vector<1xf32>
        %111 = vector.shape_cast %110 : vector<1xf32> to vector<1x1xf32>
        %cst_44 = arith.constant 1.280000e+02 : f32
        %112 = vector.broadcast %cst_44 : f32 to vector<1x1xf32>
        %113 = arith.divf %111, %112 : vector<1x1xf32>
        %c0_45 = arith.constant 0 : index
        %c0_46 = arith.constant 0 : index
        %114 = vector.load %arg20[%c0_45, %c0_46] : memref<1x1xf32, #tpu.memory_space<vmem>>, vector<1x1xf32>
        tpu.vector_store %arg20[%c0_45, %c0_46], %113 {strides = array<i32>} : memref<1x1xf32, #tpu.memory_space<vmem>>, vector<1x1xf32>,
      } else {
      }
      %c0_31 = arith.constant 0 : index
      %c0_32 = arith.constant 0 : index
      %96 = vector.load %arg20[%c0_31, %c0_32] : memref<1x1xf32, #tpu.memory_space<vmem>>, vector<1x1xf32>
      %97 = vector.broadcast %96 : vector<1x1xf32> to vector<1x128xf32>
      %98 = arith.subf %88, %97 : vector<1x128xf32>
      %c0_33 = arith.constant 0 : index
      %c0_34 = arith.constant 0 : index
      %99 = vector.load %arg21[%c0_33, %c0_34] : memref<1x1xf32, #tpu.memory_space<vmem>>, vector<1x1xf32>
      %cst_35 = arith.constant dense<0.000000e+00> : vector<1xf32>
      %100 = vector.multi_reduction <add>, %98, %cst_35 [1] : vector<1x128xf32> to vector<1xf32>
      %101 = vector.shape_cast %100 : vector<1xf32> to vector<1x1xf32>
      %102 = arith.addf %99, %101 : vector<1x1xf32>
      %c0_36 = arith.constant 0 : index
      %c0_37 = arith.constant 0 : index
      %103 = vector.load %arg21[%c0_36, %c0_37] : memref<1x1xf32, #tpu.memory_space<vmem>>, vector<1x1xf32>
      tpu.vector_store %arg21[%c0_36, %c0_37], %102 {strides = array<i32>} : memref<1x1xf32, #tpu.memory_space<vmem>>, vector<1x1xf32>,
      %c0_38 = arith.constant 0 : index
      %c0_39 = arith.constant 0 : index
      %104 = vector.load %arg22[%c0_38, %c0_39] : memref<1x1xf32, #tpu.memory_space<vmem>>, vector<1x1xf32>
      %105 = arith.mulf %98, %98 : vector<1x128xf32>
      %cst_40 = arith.constant dense<0.000000e+00> : vector<1xf32>
      %106 = vector.multi_reduction <add>, %105, %cst_40 [1] : vector<1x128xf32> to vector<1xf32>
      %107 = vector.shape_cast %106 : vector<1xf32> to vector<1x1xf32>
      %108 = arith.addf %104, %107 : vector<1x1xf32>
      %c0_41 = arith.constant 0 : index
      %c0_42 = arith.constant 0 : index
      %109 = vector.load %arg22[%c0_41, %c0_42] : memref<1x1xf32, #tpu.memory_space<vmem>>, vector<1x1xf32>
      tpu.vector_store %arg22[%c0_41, %c0_42], %108 {strides = array<i32>} : memref<1x1xf32, #tpu.memory_space<vmem>>, vector<1x1xf32>,
    } else {
    }
    %c2_i32 = arith.constant 2 : i32
    %11 = arith.cmpi eq, %arg0, %c2_i32 : i32
    %c0_i32_5 = arith.constant 0 : i32
    %12 = arith.cmpi eq, %arg1, %c0_i32_5 : i32
    %13 = arith.andi %11, %12 : i1
    %14 = arith.extui %13 : i1 to i32
    %c0_i32_6 = arith.constant 0 : i32
    %15 = arith.cmpi ne, %14, %c0_i32_6 : i32
    scf.if %15 {
      %c0 = arith.constant 0 : index
      %c0_9 = arith.constant 0 : index
      %19 = vector.load %arg21[%c0, %c0_9] : memref<1x1xf32, #tpu.memory_space<vmem>>, vector<1x1xf32>
      %cst = arith.constant 0.001953125 : f32
      %20 = vector.broadcast %cst : f32 to vector<1x1xf32>
      %21 = arith.mulf %19, %20 : vector<1x1xf32>
      %c0_10 = arith.constant 0 : index
      %c0_11 = arith.constant 0 : index
      %22 = vector.load %arg20[%c0_10, %c0_11] : memref<1x1xf32, #tpu.memory_space<vmem>>, vector<1x1xf32>
      %23 = arith.addf %22, %21 : vector<1x1xf32>
      %c0_12 = arith.constant 0 : index
      %c0_13 = arith.constant 0 : index
      %24 = vector.load %arg22[%c0_12, %c0_13] : memref<1x1xf32, #tpu.memory_space<vmem>>, vector<1x1xf32>
      %cst_14 = arith.constant 0.001953125 : f32
      %25 = vector.broadcast %cst_14 : f32 to vector<1x1xf32>
      %26 = arith.mulf %24, %25 : vector<1x1xf32>
      %27 = arith.mulf %21, %21 : vector<1x1xf32>
      %28 = arith.subf %26, %27 : vector<1x1xf32>
      %c0_15 = arith.constant 0 : index
      %c0_16 = arith.constant 0 : index
      %29 = vector.load %arg11[%c0_15, %c0_16] : memref<1x1xf32, #tpu.memory_space<vmem>>, vector<1x1xf32>
      %cst_17 = arith.constant 9.99999974E-6 : f32
      %30 = vector.broadcast %cst_17 : f32 to vector<1x1xf32>
      %31 = arith.addf %28, %30 : vector<1x1xf32>
      %32 = math.rsqrt %31 : vector<1x1xf32>
      %33 = arith.mulf %29, %32 : vector<1x1xf32>
      %c0_18 = arith.constant 0 : index
      %c0_19 = arith.constant 0 : index
      %34 = vector.load %arg21[%c0_18, %c0_19] : memref<1x1xf32, #tpu.memory_space<vmem>>, vector<1x1xf32>
      tpu.vector_store %arg21[%c0_18, %c0_19], %33 {strides = array<i32>} : memref<1x1xf32, #tpu.memory_space<vmem>>, vector<1x1xf32>,
      %c0_20 = arith.constant 0 : index
      %c0_21 = arith.constant 0 : index
      %35 = vector.load %arg12[%c0_20, %c0_21] : memref<1x1xf32, #tpu.memory_space<vmem>>, vector<1x1xf32>
      %36 = arith.mulf %23, %33 : vector<1x1xf32>
      %37 = arith.subf %35, %36 : vector<1x1xf32>
      %c0_22 = arith.constant 0 : index
      %c0_23 = arith.constant 0 : index
      %38 = vector.load %arg22[%c0_22, %c0_23] : memref<1x1xf32, #tpu.memory_space<vmem>>, vector<1x1xf32>
      tpu.vector_store %arg22[%c0_22, %c0_23], %37 {strides = array<i32>} : memref<1x1xf32, #tpu.memory_space<vmem>>, vector<1x1xf32>,
    } else {
    }
    %c2_i32_7 = arith.constant 2 : i32
    %16 = arith.cmpi eq, %arg0, %c2_i32_7 : i32
    %17 = arith.extui %16 : i1 to i32
    %c0_i32_8 = arith.constant 0 : i32
    %18 = arith.cmpi ne, %17, %c0_i32_8 : i32
    scf.if %18 {
      %19 = arith.index_cast %arg1 : i32 to index
      %c0 = arith.constant 0 : index
      %c0_9 = arith.constant 0 : index
      %20 = vector.load %arg23[%19, %c0, %c0_9] : memref<4x1x128xf32, #tpu.memory_space<vmem>>, vector<1x1x128xf32>
      %21 = vector.shape_cast %20 : vector<1x1x128xf32> to vector<1x128xf32>
      %c0_10 = arith.constant 0 : index
      %c0_11 = arith.constant 0 : index
      %22 = vector.load %arg21[%c0_10, %c0_11] : memref<1x1xf32, #tpu.memory_space<vmem>>, vector<1x1xf32>
      %23 = vector.broadcast %22 : vector<1x1xf32> to vector<1x128xf32>
      %24 = arith.mulf %21, %23 : vector<1x128xf32>
      %c0_12 = arith.constant 0 : index
      %c0_13 = arith.constant 0 : index
      %25 = vector.load %arg22[%c0_12, %c0_13] : memref<1x1xf32, #tpu.memory_space<vmem>>, vector<1x1xf32>
      %26 = vector.broadcast %25 : vector<1x1xf32> to vector<1x128xf32>
      %27 = arith.addf %24, %26 : vector<1x128xf32>
      %28 = arith.negf %27 : vector<1x128xf32>
      %29 = math.exp %28 : vector<1x128xf32>
      %cst = arith.constant 1.000000e+00 : f32
      %30 = vector.broadcast %cst : f32 to vector<1x128xf32>
      %31 = arith.addf %30, %29 : vector<1x128xf32>
      %32 = arith.divf %30, %31 : vector<1x128xf32>
      %c0_14 = arith.constant 0 : index
      %c0_15 = arith.constant 0 : index
      %33 = vector.load %arg3[%c0_14, %c0_15] : memref<4x128xf32, #tpu.memory_space<vmem>>, vector<4x128xf32>
      %34 = vector.broadcast %32 : vector<1x128xf32> to vector<4x128xf32>
      %35 = arith.mulf %33, %34 : vector<4x128xf32>
      %c0_16 = arith.constant 0 : index
      %c0_17 = arith.constant 0 : index
      %36 = vector.load %arg13[%c0_16, %c0_17] : memref<4x128xf32, #tpu.memory_space<vmem>>, vector<4x128xf32>
      tpu.vector_store %arg13[%c0_16, %c0_17], %35 {strides = array<i32>} : memref<4x128xf32, #tpu.memory_space<vmem>>, vector<4x128xf32>,
    } else {
    }
    return
  }
  func.func @transform_0(%arg0: i32, %arg1: i32) -> (i32, i32) {
    %c2_i32 = arith.constant 2 : i32
    %0 = arith.cmpi eq, %arg0, %c2_i32 : i32
    %c0_i32 = arith.constant 0 : i32
    %1 = arith.select %0, %c0_i32, %arg1 : i32
    %c0_i32_0 = arith.constant 0 : i32
    %c0_i32_1 = arith.constant 0 : i32
    return %c0_i32_0, %1 : i32, i32
  }
  func.func @transform_1(%arg0: i32, %arg1: i32) -> (i32, i32) {
    %c0_i32 = arith.constant 0 : i32
    %c0_i32_0 = arith.constant 0 : i32
    return %c0_i32, %arg1 : i32, i32
  }
  func.func @transform_2(%arg0: i32, %arg1: i32) -> (i32, i32) {
    %c0_i32 = arith.constant 0 : i32
    %c0_i32_0 = arith.constant 0 : i32
    %c0_i32_1 = arith.constant 0 : i32
    return %c0_i32, %c0_i32_0 : i32, i32
  }
  func.func @transform_3(%arg0: i32, %arg1: i32) -> (i32, i32) {
    %c0_i32 = arith.constant 0 : i32
    %c0_i32_0 = arith.constant 0 : i32
    %c0_i32_1 = arith.constant 0 : i32
    return %c0_i32, %c0_i32_0 : i32, i32
  }
  func.func @transform_4(%arg0: i32, %arg1: i32) -> (i32, i32) {
    %c0_i32 = arith.constant 0 : i32
    %c0_i32_0 = arith.constant 0 : i32
    %c0_i32_1 = arith.constant 0 : i32
    return %c0_i32, %c0_i32_0 : i32, i32
  }
  func.func @transform_5(%arg0: i32, %arg1: i32) -> (i32, i32) {
    %c0_i32 = arith.constant 0 : i32
    %c0_i32_0 = arith.constant 0 : i32
    %c0_i32_1 = arith.constant 0 : i32
    return %c0_i32, %c0_i32_0 : i32, i32
  }
  func.func @transform_6(%arg0: i32, %arg1: i32) -> (i32, i32) {
    %c0_i32 = arith.constant 0 : i32
    %c0_i32_0 = arith.constant 0 : i32
    %c0_i32_1 = arith.constant 0 : i32
    return %c0_i32, %c0_i32_0 : i32, i32
  }
  func.func @transform_7(%arg0: i32, %arg1: i32) -> (i32, i32) {
    %c0_i32 = arith.constant 0 : i32
    %c0_i32_0 = arith.constant 0 : i32
    %c0_i32_1 = arith.constant 0 : i32
    return %c0_i32, %c0_i32_0 : i32, i32
  }
  func.func @transform_8(%arg0: i32, %arg1: i32) -> (i32, i32) {
    %c0_i32 = arith.constant 0 : i32
    %c0_i32_0 = arith.constant 0 : i32
    %c0_i32_1 = arith.constant 0 : i32
    return %c0_i32, %c0_i32_0 : i32, i32
  }
  func.func @transform_9(%arg0: i32, %arg1: i32) -> (i32, i32) {
    %c0_i32 = arith.constant 0 : i32
    %c0_i32_0 = arith.constant 0 : i32
    %c0_i32_1 = arith.constant 0 : i32
    return %c0_i32, %c0_i32_0 : i32, i32
  }
  func.func @transform_10(%arg0: i32, %arg1: i32) -> (i32, i32) {
    %c0_i32 = arith.constant 0 : i32
    %c0_i32_0 = arith.constant 0 : i32
    %c0_i32_1 = arith.constant 0 : i32
    return %c0_i32, %c0_i32_0 : i32, i32
  }
  func.func @transform_11(%arg0: i32, %arg1: i32) -> (i32, i32) {
    %c2_i32 = arith.constant 2 : i32
    %0 = arith.cmpi eq, %arg0, %c2_i32 : i32
    %c0_i32 = arith.constant 0 : i32
    %1 = arith.select %0, %arg1, %c0_i32 : i32
    %c0_i32_0 = arith.constant 0 : i32
    %c0_i32_1 = arith.constant 0 : i32
    return %c0_i32_0, %1 : i32, i32
  }
}

</mosaic_0001>

<bundles_post_ra>
// kernel: tpu_custom_call.1
= control target key start
LH: loop header
LB: loop body
LE: loop exit
PB: predicated region body
PF: predicated region fallthrough
CT: control target
= control target key end

     0   :  { %s1465_s0 = inlined_call_operand.vmem [shape: f32[4,512], index: 0, kind: input, shape index: {}]   ;;  %s1466_s1 = inlined_call_operand.vmem [shape: f32[4,512], index: 1, kind: input, shape index: {}]   ;;  %s1467_s2 = inlined_call_operand.vmem [shape: f32[8,4], index: 2, kind: input, shape index: {}]   ;;  %s1468_s3 = inlined_call_operand.vmem [shape: f32[8,1], index: 3, kind: input, shape index: {}]   ;;  %s1469_s4 = inlined_call_operand.vmem [shape: f32[8,1], index: 4, kind: input, shape index: {}]   ;;  %s1470_s5 = inlined_call_operand.vmem [shape: f32[8,4], index: 5, kind: input, shape index: {}]   ;;  %s1471_s6 = inlined_call_operand.vmem [shape: f32[8,1], index: 6, kind: input, shape index: {}]   ;;  %s1472_s7 = inlined_call_operand.vmem [shape: f32[8,1], index: 7, kind: input, shape index: {}]   ;;  %s1473_s8 = inlined_call_operand.vmem [shape: f32[8,1], index: 8, kind: input, shape index: {}]   ;;  %s1474_s9 = inlined_call_operand.<no memory space> [shape: f32[1,1], index: 9, kind: input, shape index: {}]   ;;  %s1475_s11 = inlined_call_operand.hbm [shape: f32[4,512], index: 11, kind: output, shape index: {}]   ;;  %s1476_s10 = inlined_call_operand.<no memory space> [shape: f32[1,1], index: 10, kind: input, shape index: {}]  }
   0x1   :  { %v16_v0 = vstv %s1474_s9  ;;  %v18_v1 = vstv %s1476_s10 }
   0x2   :  { %17 = vst [vmem:[#allocation12] sm:$0x1] %v16_v0  ;;  %19 = vst [vmem:[#allocation13] sm:$0x1] %v18_v1 }
   0x3   :  { %20 = vsyncpa [#allocation15], 0 }
   0x4   :  { %22 = vsyncpa [#allocation15 + $0x1], 0  ;;  %s1254_s21 = smov 0   ;;  %s1256_s22 = smov 0  }
   0x5   :  { %s1258_s23 = smov 0   ;;  %s1260_s24 = smov 0  }
   0x6   :  { %s1262_s25 = smov 0   ;;  %s1264_s26 = smov 0  }
   0x7   :  { %s1266_s9 = smov 0   ;;  %s1268_s27 = smov 0  }
   0x8 LB: > { %1484 = sst [smem:[#allocation17_spill]] %s1155_s23  ;;  %s951_s10 = sadd.s32 4294967295, %s1175_s27   ;;  %s1175_s27 = sphi %s1268_s27, %s28_s27   ;;  %s1171_s9 = sphi %s1266_s9, %s1500_s9   ;;  %s1167_s26 = sphi %s1264_s26, %s1499_s26   ;;  %s1163_s25 = sphi %s1262_s25, %s1498_s25   ;;  %s1159_s24 = sphi %s1260_s24, %s1497_s24   ;;  %s1155_s23 = sphi %s1258_s23, %s1496_s23   ;;  %s1151_s22 = sphi %s1256_s22, %s1502_s22   ;;  %s1147_s21 = sphi %s1254_s21, %s1501_s21  }
   0x9   : > { %1485 = sst [smem:[#allocation18_spill]] %s1167_s26  ;;  %s37_s28 = sadd.s32 1, %s1167_s26 }
   0xa   : > { %1486 = sst [smem:[#allocation19_spill]] %s1171_s9  ;;  %s40_s29 = sadd.s32 1, %s1171_s9 }
   0xb   : > { %p38_p0 = scmp.ge.s32.totalorder %s37_s28, 4  ;;  %p289_p1 = scmp.eq.s32.totalorder %s1171_s9, 2 }
   0xc   : > { %s952_s30 = sadd.s32 4294967294, %s1175_s27   ;;  %p306_p2 = scmp.ne.s32.totalorder %s1155_s23, %s1151_s22 }
   0xd   : > { %s1504_s28 = smov (%p38_p0, %s37_s28), 0  ;;  %s1506_s29 = smov (!%p38_p0, %s40_s29), %s1171_s9 }
   0xe   : > { %1487 = sst [smem:[#allocation20_spill]] %s1504_s28  ;;  %p42_p3 = scmp.ge.s32.totalorder %s1506_s29, 3 }
   0xf   : > { %s290_s12 = scalar_select %p289_p1, %s1167_s26, 0 }
  0x10   : > { %p307_p4 = scmp.eq.s32.totalorder %s951_s10, 11  ;;  %p312_p5 = scmp.ne.s32.totalorder %s1151_s22, %s1147_s21 }
  0x11   : > { %p313_p6 = scmp.eq.s32.totalorder %s952_s30, 11  ;;  %s1508_s29 = smov (%p42_p3, %s1506_s29), 0 }
  0x12   : > { %1488 = sst [smem:[#allocation21_spill]] %s1508_s29  ;;  %p1309_p7 = por %p307_p4, %p306_p2 }
  0x13   : > { %p1313_p8 = por %p313_p6, %p312_p5  ;;  %p291_p9 = scmp.eq.s32.totalorder %s1508_s29, 2 }
  0x14   : > { %p955_p10 = scmp.ge.s32.totalorder %s1175_s27, 1  ;;  %p376_p11 = scmp.lt.s32.totalorder %s1175_s27, 13 }
  0x15   : > { %s1490_s14 = scalar_select %p1313_p8, 1, 0 }
  0x16   : > { %s292_s15 = scalar_select %p291_p9, %s1504_s28, 0 }
  0x17   : > { %1491 = sst [smem:[#allocation22_spill]] %s1490_s14  ;;  %p377_p12 = pnand %p955_p10, %p376_p11 }
  0x18   : > { %s293_s16 = ssub.s32 %s290_s12, %s292_s15  ;;  %s296_s17 = sadd.s32 1, %s1155_s23 }
  0x19   : > { %p294_p13 = scmp.eq.s32.totalorder %s293_s16, 0  ;;  %380 = sbr.rel (%p377_p12) target bundleno = 1488 (0x5d0), region = 64 }
  0x1a   : > { %s1481_s19 = sand.u32 (!%p377_p12), 1, %s1151_s22   ;;  %p421_p0 = scmp.eq.s32.totalorder (!%p377_p12), %s1163_s25, 2 }
  0x1b   : > { %s1323_s18 = scalar_select %p294_p13, %s1155_s23, %s296_s17  }
  0x1c   : > { %s1329_s20 = sshll.u32 (!%p377_p12), %s1481_s19, 2  ;;  %p429_p1 = scmp.lt.s32.totalorder (!%p377_p12), %s1159_s24, 3 }
  0x1d   : > { %1492 = sst [smem:[#allocation23_spill]] %s1323_s18  ;;  %s420_s19 = scalar_lea.vmem (!%p377_p12), [#allocation14], %s1329_s20 }
  0x1e   : > { %p959_p3 = scmp.ne.s32.totalorder (!%p377_p12), %s1163_s25, 0 }
  0x20   : > { %s422_s10 = scalar_select %p421_p0, 0, %s1159_s24 }
  0x21   : > { %s430_s30 = scalar_select %p429_p1, %s1159_s24, 3 }
  0x22   : > { %p423_p2 = scmp.lt.s32.totalorder %s422_s10, 3  ;;  %438 = sbr.rel (%p959_p3) target bundleno = 618 (0x26a), region = 68  ;;  %v481_v2 = vld [vmem:[%s1470_s5] sm:$0xff] (!%p959_p3)  ;;  %v1177_v4 = vmov (!%p959_p3), 0   ;;  %v1178_v5 = vmov (!%p959_p3), 1   ;;  %v1179_v6 = vmov (!%p959_p3), 2   ;;  %v446_v8 = vlaneseq (!%p959_p3) }
  0x23   : > { %s958_s12 = sshll.u32 %s430_s30, 2  ;;  %v439_v3 = vld [vmem:[%s1467_s2] sm:$0xff] (!%p959_p3)  ;;  %1052 = vset.pattern.permute.xlu1 (!%p959_p3), %v1177_v4  ;;  %1050 = vset.pattern.permute.xlu0 (!%p959_p3), %v1177_v4  ;;  %v1180_v7 = vmov (!%p959_p3), 3   ;;  %p960_p4 = scmp.ne.s32.totalorder (!%p959_p3), %s1159_s24, 0 }
  0x24   : > { %s1510_s10 = smov (!%p423_p2, %s422_s10), 3  ;;  %s1339_s17 = scalar_lea.vmem %s1466_s1, %s958_s12  ;;  %485 = vperm.xlu1 (!%p959_p3), %1052, %v481_v2   ;;  %443 = vperm.xlu0 (!%p959_p3), %1050, %v439_v3   ;;  %v447_v9 = vshrl.u32 (!%p959_p3), %v446_v8, 7 }
  0x25   : > { %s957_s29 = sshll.u32 %s1510_s10, 2  ;;  %v482_v20 = vld [vmem:[%s1339_s17] sm:$0xf] (!%p959_p3) }
  0x26   : > { %s1344_s26 = scalar_lea.vmem %s1465_s0, %s957_s29  ;;  %v448_v13 = vsub.s32 (!%p959_p3), 0, %v447_v9  ;;  %v457_v14 = vsub.s32 (!%p959_p3), 1, %v447_v9  ;;  %v467_v17 = vsub.s32 (!%p959_p3), 2, %v447_v9  ;;  %v477_v24 = vsub.s32 (!%p959_p3), 3, %v447_v9 }
  0x27   : > { %v440_v12 = vld [vmem:[%s1344_s26] sm:$0xf] (!%p959_p3) }
  0x28   : > { %1053 = vset.pattern.permute.xlu1 (!%p959_p3), %v1178_v5  ;;  %1051 = vset.pattern.permute.xlu0 (!%p959_p3), %v1178_v5  ;;  %v449_v15 = vrot.slane (!%p959_p3), %v440_v12, %v448_v13  ;;  %v458_v16 = vrot.slane (!%p959_p3), %v440_v12, %v457_v14  ;;  %v468_v23 = vrot.slane (!%p959_p3), %v440_v12, %v467_v17 }
  0x29   : > { %494 = vperm.xlu1 %1053, %v481_v2   ;;  %452 = vperm.xlu0 %1051, %v439_v3   ;;  %v500_v25 = vrot.slane %v482_v20, %v457_v14  ;;  %v491_v27 = vrot.slane %v482_v20, %v448_v13  ;;  %v510_v30 = vrot.slane %v482_v20, %v467_v17  ;;  %vm531_vm0 = vcmask (!%p960_p4), 7168  }
  0x2a   : > { %v478_v31 = vrot.slane %v440_v12, %v477_v24  ;;  %v520_v35 = vrot.slane %v482_v20, %v477_v24  ;;  %vm541_vm1 = vcmask (!%p960_p4), 0   ;;  %v1181_v46 = vmov (!%p960_p4), 0.0  }
  0x2b   : > { %537 = vst.msk [vmem:[#allocation3] sm:$0xff] (!%p960_p4), %vm531_vm0, %v1181_v46  ;;  %538 = vst.msk [vmem:[#allocation4] sm:$0xff] (!%p960_p4), %vm531_vm0, %v1181_v46 }
  0x2c   : > { %539 = vst.msk [vmem:[#allocation6] sm:$0xff] (!%p960_p4), %vm531_vm0, %v1181_v46  ;;  %540 = vst.msk [vmem:[#allocation7] sm:$0xff] (!%p960_p4), %vm531_vm0, %v1181_v46 }
  0x2d   : > { %1054 = vset.pattern.permute.xlu1 %v1179_v6  ;;  %1055 = vset.pattern.permute.xlu0 %v1179_v6  ;;  %542 = vst.msk [vmem:[#allocation9] sm:$0x1] (!%p960_p4), %vm541_vm1, %v1181_v46  ;;  %543 = vst.msk [vmem:[#allocation10] sm:$0x1] (!%p960_p4), %vm541_vm1, %v1181_v46 }
  0x2e   : > { %462 = vperm.xlu1 %1054, %v439_v3   ;;  %504 = vperm.xlu0 %1055, %v481_v2  }
  0x32   : > { %1056 = vset.pattern.permute.xlu1 %v1180_v7  ;;  %1057 = vset.pattern.permute.xlu0 %v1180_v7 }
  0x33   : > { %472 = vperm.xlu1 %1056, %v439_v3  }
  0x37   : > { %514 = vperm.xlu1 %1056, %v481_v2  }
  0xa3   : > { %v486_v10 = vpop.permute.xlu1 %485  ;;  %v444_v11 = vpop.permute.xlu0 %443 }
  0xa4   : > { %v450_v21 = vmul.f32 %v449_v15, %v444_v11  ;;  %v492_v36 = vmul.f32 %v491_v27, %v486_v10 }
  0xa8   : > { %v495_v18 = vpop.permute.xlu1 %494  ;;  %v453_v19 = vpop.permute.xlu0 %452 }
  0xa9   : > { %v459_v22 = vmul.f32 %v458_v16, %v453_v19  ;;  %v501_v33 = vmul.f32 %v500_v25, %v495_v18 }
  0xab   : > { %v460_v28 = vadd.f32 %v459_v22, %v450_v21  ;;  %v502_v40 = vadd.f32 %v501_v33, %v492_v36 }
  0xad   : > { %v463_v26 = vpop.permute.xlu1 %462  ;;  %v505_v32 = vpop.permute.xlu0 %504 }
  0xae   : > { %v469_v29 = vmul.f32 %v468_v23, %v463_v26  ;;  %v511_v38 = vmul.f32 %v510_v30, %v505_v32 }
  0xb0   : > { %v470_v37 = vadd.f32 %v469_v29, %v460_v28  ;;  %v512_v43 = vadd.f32 %v511_v38, %v502_v40 }
  0xb2   : > { %v473_v34 = vpop.permute.xlu1 %472 }
  0xb3   : > { %v479_v39 = vmul.f32 %v478_v31, %v473_v34  ;;  %526 = sbr.rel (%p960_p4) target bundleno = 332 (0x14c), region = 72 }
  0xb5   : > { %v480_v41 = vadd.f32 %v479_v39, %v470_v37 }
  0xb6   : > { %v515_v42 = vpop.permute.xlu1 %514 }
  0xb7   : > { %v521_v44 = vmul.f32 %v520_v35, %v515_v42  ;;  %527 = vadd.xlane.f32.xlu0 (!%p960_p4), %v480_v41 }
  0xb9   : > { %v522_v45 = vadd.f32 %v521_v44, %v512_v43 }
  0xbb   : > { %533 = vadd.xlane.f32.xlu0 %v522_v45 }
 0x144   : > { %v528_v47 = vpop.xlane.xlu0 %527 }
 0x145   : > { %v530_v48 = vmul.f32 0.0078125, %v528_v47 }
 0x147   : > { %532 = vst.msk [vmem:[#allocation2] sm:$0xff] %vm531_vm0, %v530_v48 }
 0x148   : > { %v534_v49 = vpop.xlane.xlu0 %533 }
 0x149   : > { %v535_v50 = vmul.f32 0.0078125, %v534_v49 }
 0x14b   : > { %536 = vst.msk [vmem:[#allocation5] sm:$0xff] %vm531_vm0, %v535_v50 }
 0x14c PF: > { %1058 = vset.pattern.permute.xlu0 %v1177_v4  ;;  %v558_v59 = vld [vmem:[#allocation3] sm:$0xff]  ;;  %vm562_vm2 = vcmask 7168   ;;  %v564_v62 = vld [vmem:[#allocation4] sm:$0xff]  ;;  %v570_v63 = vld [vmem:[#allocation6] sm:$0xff] }
 0x14d   : > { %v575_v4 = vld [vmem:[#allocation7] sm:$0xff] }
 0x14e   : > { %v544_v51 = vld [vmem:[#allocation2] sm:$0xff] }
 0x14f   : > { %547 = vperm.xlu0 %1058, %v544_v51  }
 0x152   : > { %v551_v52 = vld [vmem:[#allocation5] sm:$0xff] }
 0x153   : > { %554 = vperm.xlu0 %1058, %v551_v52  }
 0x1ce   : > { %v548_v53 = vpop.permute.xlu0 %547 }
 0x1cf   : > { %v550_v54 = vsub.f32 %v480_v41, %v548_v53 }
 0x1d1   : > { %559 = vadd.xlane.f32.xlu1 %v550_v54  ;;  %v565_v57 = vmul.f32 %v550_v54, %v550_v54 }
 0x1d2   : > { %v555_v55 = vpop.permute.xlu0 %554 }
 0x1d3   : > { %v557_v56 = vsub.f32 %v522_v45, %v555_v55 }
 0x1d5   : > { %566 = vadd.xlane.f32.xlu1 %v565_v57  ;;  %571 = vadd.xlane.f32.xlu0 %v557_v56  ;;  %v576_v58 = vmul.f32 %v557_v56, %v557_v56 }
 0x1d9   : > { %577 = vadd.xlane.f32.xlu1 %v576_v58 }
 0x25e   : > { %v560_v60 = vpop.xlane.xlu1 %559 }
 0x25f   : > { %v561_v61 = vadd.f32 %v560_v60, %v558_v59 }
 0x261   : > { %563 = vst.msk [vmem:[#allocation3] sm:$0xff] %vm562_vm2, %v561_v61 }
 0x262   : > { %v567_v0 = vpop.xlane.xlu1 %566  ;;  %v572_v1 = vpop.xlane.xlu0 %571 }
 0x263   : > { %v568_v2 = vadd.f32 %v567_v0, %v564_v62  ;;  %v573_v3 = vadd.f32 %v572_v1, %v570_v63 }
 0x265   : > { %569 = vst.msk [vmem:[#allocation4] sm:$0xff] %vm562_vm2, %v568_v2  ;;  %574 = vst.msk [vmem:[#allocation6] sm:$0xff] %vm562_vm2, %v573_v3 }
 0x266   : > { %v578_v5 = vpop.xlane.xlu1 %577 }
 0x267   : > { %v579_v6 = vadd.f32 %v578_v5, %v575_v4 }
 0x269   : > { %580 = vst.msk [vmem:[#allocation7] sm:$0xff] %vm562_vm2, %v579_v6 }
 0x26a PF: > { %p581_p5 = scmp.eq.s32.totalorder %s1163_s25, 1  ;;  %p582_p6 = scmp.eq.s32.totalorder %s1159_s24, 0 }
 0x26c   : > { %p583_p9 = pnand %p582_p6, %p581_p5 }
 0x26d   : > { %v587_v7 = vld [vmem:[#allocation3] sm:$0xff] (!%p583_p9)  ;;  %v591_v8 = vld [vmem:[#allocation4] sm:$0xff] (!%p583_p9)  ;;  %v605_v11 = vld [vmem:[#allocation6] sm:$0xff] (!%p583_p9)  ;;  %vm599_vm3 = vcmask (!%p583_p9), 7168  }
 0x26e   : > { %586 = sbr.rel (%p583_p9) target bundleno = 649 (0x289), region = 76  ;;  %v588_v9 = vmul.f32 (!%p583_p9), 0.001953125, %v587_v7  ;;  %v592_v10 = vmul.f32 (!%p583_p9), 0.001953125, %v591_v8  ;;  %v606_v12 = vmul.f32 (!%p583_p9), 0.001953125, %v605_v11  ;;  %v589_v21 = vld [vmem:[#allocation2] sm:$0xff] (!%p583_p9)  ;;  %v607_v22 = vld [vmem:[#allocation5] sm:$0xff] (!%p583_p9) }
 0x26f   : > { %v595_v23 = vld [vmem:[%s1468_s3] sm:$0xff] (!%p583_p9) }
 0x270   : > { %v609_v13 = vld [vmem:[#allocation7] sm:$0xff] (!%p583_p9)  ;;  %v593_v14 = vmul.f32 (!%p583_p9), %v588_v9, %v588_v9  ;;  %v611_v16 = vmul.f32 (!%p583_p9), %v606_v12, %v606_v12  ;;  %v590_v24 = vadd.f32 (!%p583_p9), %v589_v21, %v588_v9  ;;  %v613_v25 = vld [vmem:[%s1471_s6] sm:$0xff] (!%p583_p9)  ;;  %v608_v27 = vadd.f32 (!%p583_p9), %v607_v22, %v606_v12 }
 0x271   : > { %v610_v15 = vmul.f32 (!%p583_p9), 0.001953125, %v609_v13  ;;  %v601_v30 = vld [vmem:[%s1469_s4] sm:$0xff] (!%p583_p9) }
 0x272   : > { %v594_v17 = vsub.f32 (!%p583_p9), %v592_v10, %v593_v14  ;;  %v618_v33 = vld [vmem:[%s1472_s7] sm:$0xff] (!%p583_p9) }
 0x273   : > { %v612_v18 = vsub.f32 (!%p583_p9), %v610_v15, %v611_v16 }
 0x274   : > { %v596_v19 = vadd.f32 (!%p583_p9), 1e-05, %v594_v17 }
 0x275   : > { %v614_v20 = vadd.f32 1e-05, %v612_v18 }
 0x276   : > { %1059 = vrsqrt.f32 %v596_v19 }
 0x277   : > { %1061 = vrsqrt.f32 %v614_v20 }
 0x280   : > { %v1060_v26 = vpop.eup %1059 }
 0x281   : > { %v1062_v28 = vpop.eup %1061  ;;  %v598_v29 = vmul.f32 %v1060_v26, %v595_v23 }
 0x282   : > { %v616_v31 = vmul.f32 %v1062_v28, %v613_v25 }
 0x283   : > { %600 = vst.msk [vmem:[#allocation3] sm:$0xff] %vm599_vm3, %v598_v29  ;;  %v602_v32 = vmul.f32 %v598_v29, %v590_v24 }
 0x284   : > { %617 = vst.msk [vmem:[#allocation6] sm:$0xff] %vm599_vm3, %v616_v31  ;;  %v619_v34 = vmul.f32 %v616_v31, %v608_v27 }
 0x285   : > { %v603_v35 = vsub.f32 %v601_v30, %v602_v32 }
 0x286   : > { %v620_v36 = vsub.f32 %v618_v33, %v619_v34 }
 0x287   : > { %604 = vst.msk [vmem:[#allocation4] sm:$0xff] %vm599_vm3, %v603_v35 }
 0x288   : > { %621 = vst.msk [vmem:[#allocation7] sm:$0xff] %vm599_vm3, %v620_v36 }
 0x289 PF: > { %p961_p10 = scmp.ne.s32.totalorder %s1163_s25, 1 }
 0x28a   : > { %v625_v37 = vld [vmem:[%s1467_s2] sm:$0xff] (!%p961_p10)  ;;  %v1182_v38 = vmov (!%p961_p10), 2   ;;  %v1183_v39 = vmov (!%p961_p10), 0   ;;  %v1184_v41 = vmov (!%p961_p10), 1   ;;  %v1185_v42 = vmov (!%p961_p10), 3   ;;  %v709_v43 = vld [vmem:[#allocation3] sm:$0xff] (!%p961_p10) }
 0x28b   : > { %624 = sbr.rel (%p961_p10) target bundleno = 1262 (0x4ee), region = 80  ;;  %1065 = vset.pattern.permute.xlu1 (!%p961_p10), %v1182_v38  ;;  %1063 = vset.pattern.permute.xlu0 (!%p961_p10), %v1183_v39  ;;  %v667_v40 = vld [vmem:[%s1470_s5] sm:$0xff] (!%p961_p10)  ;;  %v632_v48 = vlaneseq (!%p961_p10)  ;;  %p962_p11 = scmp.ne.s32.totalorder (!%p961_p10), %s1159_s24, 0 }
 0x28c   : > { %648 = vperm.xlu1 (!%p961_p10), %1065, %v625_v37   ;;  %629 = vperm.xlu0 (!%p961_p10), %1063, %v625_v37   ;;  %v723_v46 = vld [vmem:[#allocation6] sm:$0xff] (!%p961_p10) }
 0x28d   : > { %v739_v47 = vld [vmem:[%s1473_s8] sm:$0xff] (!%p961_p10)  ;;  %v633_v50 = vshrl.u32 (!%p961_p10), %v632_v48, 7 }
 0x28e   : > { %v716_v45 = vld [vmem:[#allocation4] sm:$0xff] (!%p961_p10)  ;;  %v626_v55 = vld [vmem:[%s1344_s26] sm:$0xf] (!%p961_p10)  ;;  %s752_s26 = scalar_lea.vmem (!%p961_p10), [#allocation11], %s1159_s24 }
 0x28f   : > { %v731_v44 = vld [vmem:[#allocation7] sm:$0xff] (!%p961_p10)  ;;  %v1390_v52 = vsub.s32 (!%p961_p10), 0, %v633_v50  ;;  %v643_v53 = vsub.s32 (!%p961_p10), 1, %v633_v50  ;;  %v653_v59 = vsub.s32 (!%p961_p10), 2, %v633_v50  ;;  %v663_v63 = vsub.s32 (!%p961_p10), 3, %v633_v50 }
 0x290   : > { %1066 = vset.pattern.permute.xlu1 (!%p961_p10), %v1183_v39  ;;  %1064 = vset.pattern.permute.xlu0 (!%p961_p10), %v1184_v41  ;;  %v668_v1 = vld [vmem:[%s1339_s17] sm:$0xf] (!%p961_p10) }
 0x291   : > { %671 = vperm.xlu1 (!%p961_p10), %1066, %v667_v40   ;;  %638 = vperm.xlu0 (!%p961_p10), %1064, %v625_v37   ;;  %v635_v56 = vrot.slane (!%p961_p10), %v626_v55, %v1390_v52  ;;  %v644_v57 = vrot.slane (!%p961_p10), %v626_v55, %v643_v53  ;;  %v654_v0 = vrot.slane (!%p961_p10), %v626_v55, %v653_v59 }
 0x292   : > { %v686_v4 = vrot.slane %v668_v1, %v643_v53  ;;  %v664_v5 = vrot.slane %v626_v55, %v663_v63  ;;  %v677_v8 = vrot.slane %v668_v1, %v1390_v52  ;;  %v696_v9 = vrot.slane %v668_v1, %v653_v59 }
 0x293   : > { %v706_v13 = vrot.slane %v668_v1, %v663_v63  ;;  %vm761_vm4 = vcmask (!%p962_p11), 0  }
 0x295   : > { %1067 = vset.pattern.permute.xlu1 %v1184_v41  ;;  %1068 = vset.pattern.permute.xlu0 %v1185_v42 }
 0x296   : > { %680 = vperm.xlu1 %1067, %v667_v40   ;;  %658 = vperm.xlu0 %1068, %v625_v37  }
 0x29a   : > { %1069 = vset.pattern.permute.xlu1 %v1182_v38  ;;  %1071 = vset.pattern.permute.xlu0 %v1183_v39 }
 0x29b   : > { %690 = vperm.xlu1 %1069, %v667_v40   ;;  %712 = vperm.xlu0 %1071, %v709_v43  }
 0x29f   : > { %1070 = vset.pattern.permute.xlu1 %v1185_v42  ;;  %734 = vperm.xlu0 %1071, %v731_v44  }
 0x2a0   : > { %700 = vperm.xlu1 %1070, %v667_v40  }
 0x2a4   : > { %1072 = vset.pattern.permute.xlu1 %v1183_v39 }
 0x2a5   : > { %719 = vperm.xlu1 %1072, %v716_v45  }
 0x2a9   : > { %726 = vperm.xlu1 %1072, %v723_v46  }
 0x2ad   : > { %742 = vperm.xlu1 %1072, %v739_v47  }
 0x30b   : > { %v649_v49 = vpop.permute.xlu1 %648  ;;  %v630_v51 = vpop.permute.xlu0 %629 }
 0x30c   : > { %v636_v61 = vmul.f32 %v635_v56, %v630_v51  ;;  %v655_v7 = vmul.f32 %v654_v0, %v649_v49 }
 0x310   : > { %v672_v54 = vpop.permute.xlu1 %671  ;;  %v639_v58 = vpop.permute.xlu0 %638 }
 0x311   : > { %v645_v62 = vmul.f32 %v644_v57, %v639_v58  ;;  %v678_v15 = vmul.f32 %v677_v8, %v672_v54 }
 0x313   : > { %v646_v3 = vadd.f32 %v645_v62, %v636_v61 }
 0x315   : > { %v681_v60 = vpop.permute.xlu1 %680  ;;  %v659_v6 = vpop.permute.xlu0 %658  ;;  %v656_v12 = vadd.f32 %v655_v7, %v646_v3 }
 0x316   : > { %v687_v10 = vmul.f32 %v686_v4, %v681_v60  ;;  %v665_v11 = vmul.f32 %v664_v5, %v659_v6 }
 0x318   : > { %v688_v17 = vadd.f32 %v687_v10, %v678_v15  ;;  %v666_v18 = vadd.f32 %v665_v11, %v656_v12 }
 0x31a   : > { %v691_v2 = vpop.permute.xlu1 %690  ;;  %v713_v20 = vpop.permute.xlu0 %712 }
 0x31b   : > { %v697_v16 = vmul.f32 %v696_v9, %v691_v2  ;;  %v715_v23 = vmul.f32 %v713_v20, %v666_v18 }
 0x31d   : > { %v698_v22 = vadd.f32 %v697_v16, %v688_v17 }
 0x31e   : > { %v735_v29 = vpop.permute.xlu0 %734 }
 0x31f   : > { %v701_v14 = vpop.permute.xlu1 %700 }
 0x320   : > { %v707_v19 = vmul.f32 %v706_v13, %v701_v14 }
 0x322   : > { %v708_v24 = vadd.f32 %v707_v19, %v698_v22 }
 0x324   : > { %v720_v21 = vpop.permute.xlu1 %719 }
 0x325   : > { %v722_v26 = vadd.f32 %v720_v21, %v715_v23 }
 0x328   : > { %v727_v25 = vpop.permute.xlu1 %726 }
 0x329   : > { %v729_v27 = vmul.f32 %v727_v25, %v708_v24 }
 0x32b   : > { %v730_v28 = vadd.f32 %v729_v27, %v722_v26 }
 0x32c   : > { %v743_v32 = vpop.permute.xlu1 %742 }
 0x32d   : > { %v737_v30 = vadd.f32 %v735_v29, %v730_v28 }
 0x32f   : > { %v738_v31 = vmax.f32 %v737_v30, 0.0 }
 0x331   : > { %v745_v33 = vmul.f32 %v743_v32, %v738_v31 }
 0x333   : > { %v746_v34 = vrot.slane %v745_v33, 4 }
 0x335   : > { %v747_v35 = vadd.f32 %v746_v34, %v745_v33 }
 0x337   : > { %v748_v36 = vrot.slane %v747_v35, 2 }
 0x339   : > { %v749_v37 = vadd.f32 %v748_v36, %v747_v35  ;;  %756 = sbr.rel (%p962_p11) target bundleno = 976 (0x3d0), region = 84 }
 0x33b   : > { %v750_v38 = vrot.slane %v749_v37, 1 }
 0x33d   : > { %v751_v40 = vadd.f32 %v750_v38, %v749_v37 }
 0x33f   : > { %753 = vst [vmem:[%s752_s26] sm:$0x1] %v751_v40  ;;  %757 = vadd.xlane.f32.xlu0 (!%p962_p11), %v751_v40 }
 0x3cc   : > { %v758_v41 = vpop.xlane.xlu0 %757 }
 0x3cd   : > { %v760_v42 = vmul.f32 0.0078125, %v758_v41 }
 0x3cf   : > { %762 = vst.msk [vmem:[#allocation8] sm:$0x1] %vm761_vm4, %v760_v42 }
 0x3d0 PF: > { %1073 = vset.pattern.permute.xlu0 %v1183_v39  ;;  %v774_v48 = vld [vmem:[#allocation9] sm:$0x1]  ;;  %vm778_vm5 = vcmask 0   ;;  %v780_v50 = vld [vmem:[#allocation10] sm:$0x1] }
 0x3d6   : > { %v763_v43 = vld [vmem:[#allocation8] sm:$0x1] }
 0x3d7   : > { %766 = vperm.xlu0 %1073, %v763_v43  }
 0x456   : > { %v767_v44 = vpop.permute.xlu0 %766 }
 0x457   : > { %v772_v45 = vrot.slane %v767_v44, %v1390_v52 }
 0x459   : > { %v773_v46 = vsub.f32 %v751_v40, %v772_v45 }
 0x45b   : > { %775 = vadd.xlane.f32.xlu0 %v773_v46  ;;  %v781_v47 = vmul.f32 %v773_v46, %v773_v46 }
 0x45d   : > { %782 = vadd.xlane.f32.xlu1 %v781_v47 }
 0x4e8   : > { %v776_v49 = vpop.xlane.xlu0 %775 }
 0x4e9   : > { %v777_v51 = vadd.f32 %v776_v49, %v774_v48 }
 0x4ea   : > { %v783_v53 = vpop.xlane.xlu1 %782 }
 0x4eb   : > { %779 = vst.msk [vmem:[#allocation9] sm:$0x1] %vm778_vm5, %v777_v51  ;;  %v784_v54 = vadd.f32 %v783_v53, %v780_v50 }
 0x4ed   : > { %785 = vst.msk [vmem:[#allocation10] sm:$0x1] %vm778_vm5, %v784_v54 }
 0x4ee PF: > { %p787_p12 = pnand %p582_p6, %p421_p0 }
 0x4ef   : > { %v793_v60 = vld [vmem:[#allocation8] sm:$0x1] (!%p787_p12)  ;;  %v799_v61 = vld [vmem:[#allocation12] sm:$0x1] (!%p787_p12)  ;;  %vm803_vm6 = vcmask (!%p787_p12), 0  }
 0x4f0   : > { %790 = sbr.rel (%p787_p12) target bundleno = 1293 (0x50d), region = 88  ;;  %v805_v1 = vld [vmem:[#allocation13] sm:$0x1] (!%p787_p12) }
 0x4f2   : > { %v791_v39 = vld [vmem:[#allocation9] sm:$0x1] (!%p787_p12) }
 0x4f3   : > { %v792_v55 = vmul.f32 (!%p787_p12), 0.001953125, %v791_v39 }
 0x4f4   : > { %v795_v52 = vld [vmem:[#allocation10] sm:$0x1] (!%p787_p12) }
 0x4f5   : > { %v796_v56 = vmul.f32 (!%p787_p12), 0.001953125, %v795_v52  ;;  %v797_v57 = vmul.f32 (!%p787_p12), %v792_v55, %v792_v55  ;;  %v794_v62 = vadd.f32 (!%p787_p12), %v793_v60, %v792_v55 }
 0x4f7   : > { %v798_v58 = vsub.f32 %v796_v56, %v797_v57 }
 0x4f9   : > { %v800_v59 = vadd.f32 1e-05, %v798_v58 }
 0x4fb   : > { %1074 = vrsqrt.f32 %v800_v59 }
 0x505   : > { %v1075_v63 = vpop.eup %1074 }
 0x506   : > { %v802_v0 = vmul.f32 %v1075_v63, %v799_v61 }
 0x508   : > { %804 = vst.msk [vmem:[#allocation9] sm:$0x1] %vm803_vm6, %v802_v0  ;;  %v806_v2 = vmul.f32 %v802_v0, %v794_v62 }
 0x50a   : > { %v807_v3 = vsub.f32 %v805_v1, %v806_v2 }
 0x50c   : > { %808 = vst.msk [vmem:[#allocation10] sm:$0x1] %vm803_vm6, %v807_v3 }
 0x50d PF: > { %p963_p13 = scmp.ne.s32.totalorder %s1163_s25, 2 }
 0x50e   : > { %v1186_v5 = vmov (!%p963_p13), 0   ;;  %v820_v7 = vlaneseq (!%p963_p13)  ;;  %s812_s29 = scalar_lea.vmem (!%p963_p13), [#allocation11], %s1159_s24  ;;  %v842_v21 = vld [vmem:[%s1339_s17] sm:$0xf] (!%p963_p13) }
 0x50f   : > { %811 = sbr.rel (%p963_p13) target bundleno = 1463 (0x5b7), region = 92  ;;  %v814_v4 = vld [vmem:[#allocation9] sm:$0x1] (!%p963_p13)  ;;  %1076 = vset.pattern.permute.xlu0 (!%p963_p13), %v1186_v5  ;;  %v813_v12 = vld [vmem:[%s812_s29] sm:$0x1] (!%p963_p13) }
 0x510   : > { %817 = vperm.xlu0 (!%p963_p13), %1076, %v814_v4   ;;  %v821_v8 = vshrl.u32 (!%p963_p13), %v820_v7, 7 }
 0x512   : > { %v822_v9 = vsub.s32 (!%p963_p13), 0, %v821_v8 }
 0x513   : > { %v825_v6 = vld [vmem:[#allocation10] sm:$0x1] (!%p963_p13) }
 0x514   : > { %828 = vperm.xlu0 (!%p963_p13), %1076, %v825_v6  }
 0x58f   : > { %v818_v10 = vpop.permute.xlu0 %817 }
 0x590   : > { %v823_v11 = vrot.slane %v818_v10, %v822_v9 }
 0x592   : > { %v824_v14 = vmul.f32 %v823_v11, %v813_v12 }
 0x593   : > { %v829_v13 = vpop.permute.xlu0 %828 }
 0x594   : > { %v834_v15 = vrot.slane %v829_v13, %v822_v9 }
 0x596   : > { %v835_v16 = vadd.f32 %v834_v15, %v824_v14 }
 0x598   : > { %v964_v17 = vmul.f32 -1.442695, %v835_v16 }
 0x59a   : > { %1077 = vpow2.f32 %v964_v17 }
 0x5a4   : > { %v1078_v18 = vpop.eup %1077 }
 0x5a5   : > { %v839_v19 = vadd.f32 1.0, %v1078_v18 }
 0x5a7   : > { %1079 = vrcp.f32 %v839_v19 }
 0x5b1   : > { %v1080_v20 = vpop.eup %1079 }
 0x5b2   : > { %v847_v22 = vrot.slane %v1080_v20, %v822_v9 }
 0x5b4   : > { %v849_v23 = vmul.f32 %v847_v22, %v842_v21 }
 0x5b6   : > { %850 = vst [vmem:[%s420_s19] sm:$0xf] %v849_v23 }
 0x5b7 PF: > { %s867_s14 = sshll.u32 %s420_s19, 4  ;;  %s1512_s24 = smov (!%p421_p0, %s1159_s24), 0  ;;  %s1414_s14 = int_to_ptr.vmem [resolvable:$true] %s867_s14 }
 0x5b8   : > { %s966_s17 = sshll.u32 %s1512_s24, 6  ;;  %s1493_s15 = sand.u32 1, %s1151_s22  }
 0x5b9   : > { %s865_s12 = scalar_lea.hbm %s1475_s11, %s966_s17  ;;  %s852_s16 = scalar_lea.sflag [#allocation15], %s1493_s15 }
 0x5ba   : > { %s1081_s20 = scalar_lea.vmem %s1414_s14, 64  ;;  %s1187_s19 = smov [#allocation14]  }
 0x5bb   : > { %p1082_p1 = scmp.ne.s32.totalorder %s1414_s14, %s1081_s20  ;;  %s1085_s25 = sshll.u32 %s1187_s19, 4  ;;  %s1086_s25 = int_to_ptr.vmem [resolvable:$false] %s1085_s25 }
 0x5bc   : > { %s1087_s30 = scalar_lea.vmem %s1086_s25, 128  ;;  %p1088_p0 = scmp.lt.s32.totalorder %s1414_s14, %s1086_s25 }
 0x5bd   : > { %p1083_p2 = pnand %p1082_p1, %p1309_p7  ;;  %p1089_p4 = scmp.lt.s32.totalorder %s1087_s30, %s1081_s20 }
 0x5bf   : > { %p1084_p3 = pneg %p1083_p2  ;;  %p1090_p5 = por %p1089_p4, %p1088_p0 }
 0x5c1   : > { %p1091_p6 = pnand %p1090_p5, %p1084_p3 }
 0x5c3   : > { %1094 = shalt.err (!%p1091_p6)
}
 0x5c4   : > { %s1095_s24 = scalar_lea.hbm %s865_s12, 64  ;;  %s1099_s28 = scalar_lea.hbm %s1475_s11, 256 }
 0x5c5   : > { %p1096_p9 = scmp.ne.s32.totalorder %s865_s12, %s1095_s24  ;;  %p1100_p12 = scmp.lt.u32.totalorder %s865_s12, %s1475_s11 }
 0x5c6   : > { %p1101_p13 = scmp.lt.u32.totalorder %s1099_s28, %s1095_s24  ;;  %p1103_p2 = scmp.lt.u32.totalorder %s1095_s24, %s865_s12 }
 0x5c7   : > { %p1097_p10 = pnand %p1096_p9, %p1309_p7 }
 0x5c8   : > { %p1102_p1 = por %p1101_p13, %p1100_p12 }
 0x5c9   : > { %p1098_p11 = pneg %p1097_p10 }
 0x5ca   : > { %p1104_p0 = por %p1103_p2, %p1102_p1 }
 0x5cc   : > { %p1105_p3 = pnand %p1104_p0, %p1098_p11 }
 0x5ce   : > { %1108 = shalt.err (!%p1105_p3)
}
 0x5cf   : > { %969 = dma.vmem_to_hbm [thread:$0]  (%p1309_p7), %s1414_s14, 64, %s865_s12, %s852_s16  }
 0x5d0 PF: > { %p975_p4 = scmp.ge.s32.totalorder %s1175_s27, 2  ;;  %s879_s18 = sand.u32 1, %s1147_s21  }
 0x5d1   : > { %s880_s10 = scalar_lea.sflag [#allocation15], %s879_s18 }
 0x5d2   : > { %p972_p5 = pnand %p975_p4, %p1313_p8 }
 0x5d4   : > { %1142 = dma.done.wait (!%p972_p5), %s880_s10, 64  }
 0x5d5   : > { %1144 = vsyncadd (!%p972_p5), %s880_s10, 4294967232  ;;  %s28_s27 = sadd.s32 1, %s1175_s27   ;;  %s1495_s15 = sld [smem:[#allocation17_spill]] }
 0x5d6   : > { %p25_p6 = scmp.ge.s32.totalorder %s28_s27, 14   ;;  %s1496_s23 = sld [smem:[#allocation23_spill]] }
 0x5d7   : > { %s1497_s24 = sld [smem:[#allocation18_spill]]  ;;  %s1498_s25 = sld [smem:[#allocation19_spill]] }
 0x5d8   : > { %s1499_s26 = sld [smem:[#allocation20_spill]]  ;;  %s1500_s9 = sld [smem:[#allocation21_spill]] }
 0x5d9   : > { %s1501_s21 = smov %s1151_s22  ;;  %27 = sbr.rel (!%p25_p6) target bundleno = 8 (0x8), region = 132 }
 0x5db   : > { %s1502_s22 = smov %s1495_s15 }
 0x5e0   :  { %885 = vsyncpa [#allocation15], 1 }
 0x5e1   :  { %887 = vsyncpa [#allocation15 + $0x1], 1 }

</bundles_post_ra>
